<compile_context>
chip_gen: v5e
topology: v5e:2x2
jax: 0.10.0
libtpu: 0.0.40
codegen_flags: <defaults>
</compile_context>

<pallas_src>
import functools

import jax
import jax.numpy as jnp
from jax.experimental import pallas as pl
from jax.experimental.pallas import tpu as pltpu

CP = 128            # padded channel width -> lane-dense vregs / full MXU tiles
K1P = 128           # padded layer-1 im2col depth (9*cin -> 128)
LEAKY_SLOPE = 0.1


# ---------------------------------------------------------------------------
# Fused Pallas kernel: (conv 3x3/s1 -> conv 3x3/s2 -> conv 1x1) + SSE
# One grid step processes n_per batch elements; everything stays in VMEM/vregs.
# ---------------------------------------------------------------------------
def _fused_darknet_kernel(x_ref, t_ref, w1_ref, b1_ref, w2_ref, b2_ref,
                          w3_ref, b3_ref, o_ref, *, n_per, oh, ow):
    """x_ref : [n_per, 4*hw, K1P] bf16  lane-dense layer-1 im2col patches,
                                        grouped by output-pixel parity (2p+a,2q+b).
       t_ref : [n_per, hw, CP]    f32   target, channels zero-padded to CP.
       w1    : [K1P, CP] bf16 ; w2 : [9, CP, CP] bf16 ; w3 : [CP, CP] bf16
       b*    : [1, CP] f32
       o_ref : [n_per, 8, CP]     f32   partial SSE sums (host finishes reduce).
    """
    f32, bf16 = jnp.float32, jnp.bfloat16
    hw = oh * ow
    m1 = n_per * 4 * hw          # layer-1 matmul M
    m2 = n_per * hw              # layer-2/3 matmul M

    def leaky(v):
        return jnp.where(v > 0, v, LEAKY_SLOPE * v)

    # ---- layer 1: 3x3 / stride 1 / pad 1 (im2col already done, lane-dense) ----
    p1 = x_ref[...].reshape(m1, K1P)                               # bf16
    a1 = leaky(jnp.dot(p1, w1_ref[...], preferred_element_type=f32)
               + b1_ref[...])                                      # [m1, CP] f32
    a1 = a1.astype(bf16)                                           # carry bf16 between layers

    # Parity regroup: a1g[b, a, c, p, q, :] = layer-1 output pixel (2p+a, 2q+c)
    a1g = a1.reshape(n_per, 2, 2, oh, ow, CP)

    # ---- layer 2: 3x3 / stride 2 / pad 1 as 9 accumulated K=128 matmuls ----
    # out2[p,q] needs a1[2p+i-1, 2q+j-1]: offset -1/0/+1 -> parity 1/0/1; offset
    # -1 additionally shifts one row/col with a zero border (conv zero padding).
    par = (1, 0, 1)
    zero_row = jnp.zeros((n_per, 1, ow, CP), bf16)
    zero_col = jnp.zeros((n_per, oh, 1, CP), bf16)
    acc2 = None
    t = 0
    for i in range(3):
        for j in range(3):
            g = a1g[:, par[i], par[j]]                             # [n_per, oh, ow, CP] bf16
            if i == 0:   # rows p-1: shift down, zero row on top
                g = jnp.concatenate([zero_row, g[:, :oh - 1]], axis=1)
            if j == 0:   # cols q-1: shift right, zero col on the left
                g = jnp.concatenate([zero_col, g[:, :, :ow - 1]], axis=2)
            contrib = jnp.dot(g.reshape(m2, CP), w2_ref[t],
                              preferred_element_type=f32)          # [m2, CP] f32
            acc2 = contrib if acc2 is None else acc2 + contrib
            t += 1
    a2 = leaky(acc2 + b2_ref[...]).astype(bf16)                    # [m2, CP]

    # ---- layer 3: 1x1 conv (linear) ----
    gen = jnp.dot(a2, w3_ref[...], preferred_element_type=f32) + b3_ref[...]

    # ---- fused SSE epilogue: lane-dense [n_per, 8, CP] partial-sum store ----
    d = gen - t_ref[...].reshape(m2, CP)
    o_ref[...] = jnp.sum((d * d).reshape(n_per, hw // 8, 8, CP), axis=1)


# ---------------------------------------------------------------------------
# pallas_call wrapper
# ---------------------------------------------------------------------------
def _fused_forward(x_im2col, tgt, w1p, b1p, w2p, b2p, w3p, b3p, *, oh, ow):
    n = tgt.shape[0]
    hw = oh * ow
    # Keep a 2-way "parallel" grid when possible so v7x's 2 TCs each get n/2
    # batches; on single-TC v5e/v6e the extra step costs ~0.35 us (negligible).
    grid_n = 2 if (n >= 2 and n % 2 == 0) else 1
    n_per = n // grid_n
    kernel = functools.partial(_fused_darknet_kernel, n_per=n_per, oh=oh, ow=ow)
    return pl.pallas_call(
        kernel,
        out_shape=jax.ShapeDtypeStruct((n, 8, CP), jnp.float32),
        grid=(grid_n,),
        in_specs=[
            pl.BlockSpec((n_per, 4 * hw, K1P), lambda i: (i, 0, 0)),   # patches (bf16)
            pl.BlockSpec((n_per, hw, CP), lambda i: (i, 0, 0)),        # target
            pl.BlockSpec((K1P, CP), lambda i: (0, 0)),                 # weights: constant
            pl.BlockSpec((1, CP), lambda i: (0, 0)),                   #   blocks stay
            pl.BlockSpec((9, CP, CP), lambda i: (0, 0, 0)),            #   VMEM-resident
            pl.BlockSpec((1, CP), lambda i: (0, 0)),
            pl.BlockSpec((CP, CP), lambda i: (0, 0)),
            pl.BlockSpec((1, CP), lambda i: (0, 0)),
        ],
        out_specs=pl.BlockSpec((n_per, 8, CP), lambda i: (i, 0, 0)),
        compiler_params=pltpu.CompilerParams(
            dimension_semantics=("parallel",),          # v7x: batches across both TCs
            vmem_limit_bytes=32 * 1024 * 1024),         # footprint ~1-2 MiB << all gens
    )(x_im2col, tgt, w1p, b1p, w2p, b2p, w3p, b3p)


# ---------------------------------------------------------------------------
# One-time parameter prep (hoisted out of the jitted forward):
# im2col weight layout, channel zero-padding to CP lanes, bf16 cast.
# ---------------------------------------------------------------------------
def prepare_params(params):
    cin = params["w1"].shape[2]
    c1 = params["b1"].shape[0]
    c2 = params["b2"].shape[0]
    c3 = params["b3"].shape[0]
    assert 9 * cin <= K1P, "cin too large for the padded layer-1 im2col depth"
    assert max(c1, c2, c3) <= CP, "channel count exceeds CP lane padding"
    w1p = jnp.pad(params["w1"].reshape(9 * cin, c1),
                  ((0, K1P - 9 * cin), (0, CP - c1))).astype(jnp.bfloat16)
    w2p = jnp.pad(params["w2"], ((0, 0), (0, 0), (0, CP - c1), (0, CP - c2))
                  ).reshape(9, CP, CP).astype(jnp.bfloat16)
    w3p = jnp.pad(params["w3"].reshape(c2, c3),
                  ((0, CP - c2), (0, CP - c3))).astype(jnp.bfloat16)
    b1p = jnp.pad(params["b1"], (0, CP - c1)).reshape(1, CP).astype(jnp.float32)
    b2p = jnp.pad(params["b2"], (0, CP - c2)).reshape(1, CP).astype(jnp.float32)
    b3p = jnp.pad(params["b3"], (0, CP - c3)).reshape(1, CP).astype(jnp.float32)
    return {"w1": w1p, "b1": b1p, "w2": w2p, "b2": b2p, "w3": w3p, "b3": b3p}


# ---------------------------------------------------------------------------
# Model.forward equivalent: gen = Darknet(inp); loss = MSE(gen, target)
# ---------------------------------------------------------------------------
@jax.jit
def model_forward(prepped, inp_nchw, target_nchw):
    n, cin, hgt, wid = inp_nchw.shape
    assert hgt % 2 == 0 and wid % 2 == 0, "even H/W required (stride-2 parity split)"
    oh, ow = hgt // 2, wid // 2
    assert (oh * ow) % 8 == 0, "oh*ow must be a multiple of 8 for the SSE reduce"
    c3 = target_nchw.shape[1]

    # Layer-1 im2col in the wrapper (lane-dense K padded to 128, bf16), grouped
    # by output-pixel parity so the in-kernel stride-2 conv needs no regather.
    x = jnp.transpose(inp_nchw, (0, 2, 3, 1))                        # NHWC
    xp = jnp.pad(x, ((0, 0), (1, 1), (1, 1), (0, 0)))                # pad=1
    patches = jnp.concatenate(
        [xp[:, i:i + hgt, j:j + wid, :] for i in range(3) for j in range(3)],
        axis=-1)                                                     # [n, H, W, 9*cin]
    pg = jnp.stack([patches[:, a::2, b::2, :] for a in (0, 1) for b in (0, 1)],
                   axis=1)                                           # [n, 4, oh, ow, 9*cin]
    x_im2col = pg.reshape(n, 4 * oh * ow, 9 * cin)
    x_im2col = jnp.pad(x_im2col, ((0, 0), (0, 0), (0, K1P - 9 * cin))
                       ).astype(jnp.bfloat16)                        # [n, 4*hw, 128]

    # Target: NHWC, flattened spatially, channels zero-padded to CP lanes.
    tgt = jnp.transpose(target_nchw, (0, 2, 3, 1)).reshape(n, oh * ow, c3)
    tgt = jnp.pad(tgt, ((0, 0), (0, 0), (0, CP - c3)))

    sse = _fused_forward(x_im2col, tgt, prepped["w1"], prepped["b1"],
                         prepped["w2"], prepped["b2"], prepped["w3"],
                         prepped["b3"], oh=oh, ow=ow)
    return jnp.sum(sse) / (n * oh * ow * c3)


# ---------------------------------------------------------------------------
# "Darknet" parameters (weights_init_normal: N(0, 0.02), biases 0, HWIO layout)
# ---------------------------------------------------------------------------
def init_params(key, cin=4, c1=16, c2=32, cout=8, std=0.02):
    k1, k2, k3 = jax.random.split(key, 3)
    return {
        "w1": std * jax.random.normal(k1, (3, 3, cin, c1), jnp.float32),
        "b1": jnp.zeros((c1,), jnp.float32),
        "w2": std * jax.random.normal(k2, (3, 3, c1, c2), jnp.float32),
        "b2": jnp.zeros((c2,), jnp.float32),
        "w3": std * jax.random.normal(k3, (1, 1, c2, cout), jnp.float32),
        "b3": jnp.zeros((cout,), jnp.float32),
    }


def reference_loss(params, inp_nchw, target_nchw):
    """Pure-XLA f32 reference (ground-truth conv math) for validation."""
    def conv(x, w_hwio, b, stride, pad, act):
        y = jax.lax.conv_general_dilated(
            x, w_hwio, window_strides=(stride, stride),
            padding=[(pad, pad), (pad, pad)],
            dimension_numbers=("NCHW", "HWIO", "NCHW"))
        y = y + b.reshape(1, -1, 1, 1)
        return jnp.where(y > 0, y, LEAKY_SLOPE * y) if act else y

    x = conv(inp_nchw, params["w1"], params["b1"], 1, 1, True)
    x = conv(x, params["w2"], params["b2"], 2, 1, True)
    gen = conv(x, params["w3"], params["b3"], 1, 0, False)
    return jnp.mean((gen - target_nchw) ** 2)


if __name__ == "__main__":
    key = jax.random.PRNGKey(0)
    kp, ki, kt = jax.random.split(key, 3)

    params = init_params(kp, cin=4, c1=16, c2=32, cout=8)
    prepped = prepare_params(params)                               # one-time weight prep
    inp = jax.random.normal(ki, (2, 4, 16, 16), jnp.float32)       # NCHW
    target = jax.random.normal(kt, (2, 8, 8, 8), jnp.float32)      # NCHW, matches gen

    loss = model_forward(prepped, inp, target)
    jax.block_until_ready(loss)

    ref = reference_loss(params, inp, target)
    assert loss.shape == () and bool(jnp.isfinite(loss)), loss
    assert jnp.allclose(loss, ref, rtol=5e-2, atol=1e-3), (float(loss), float(ref))
    print("KERNEL_OK")
</pallas_src>

<mosaic_0001>
module attributes {stable_mosaic.version = 11 : i64} {
  func.func @_fused_darknet_kernel(%arg0: i32, %arg1: memref<1x256x128xbf16, #tpu.memory_space<vmem>>, %arg2: memref<1x64x128xf32, #tpu.memory_space<vmem>>, %arg3: memref<128x128xbf16, #tpu.memory_space<vmem>>, %arg4: memref<1x128xf32, #tpu.memory_space<vmem>>, %arg5: memref<9x128x128xbf16, #tpu.memory_space<vmem>>, %arg6: memref<1x128xf32, #tpu.memory_space<vmem>>, %arg7: memref<128x128xbf16, #tpu.memory_space<vmem>>, %arg8: memref<1x128xf32, #tpu.memory_space<vmem>>, %arg9: memref<1x8x128xf32, #tpu.memory_space<vmem>>) attributes {dimension_semantics = [#tpu.dimension_semantics<parallel>], iteration_bounds = array<i64: 2>, scalar_prefetch = 0 : i64, scratch_operands = 0 : i64, tpu.core_type = #tpu.core_type<tc>, window_params = [{transform_indices = @transform_0, window_bounds = array<i64: 1, 256, 128>}, {transform_indices = @transform_1, window_bounds = array<i64: 1, 64, 128>}, {pipeline_mode = #tpu.pipeline_mode<synchronous>, transform_indices = @transform_2, window_bounds = array<i64: 128, 128>}, {pipeline_mode = #tpu.pipeline_mode<synchronous>, transform_indices = @transform_3, window_bounds = array<i64: 1, 128>}, {pipeline_mode = #tpu.pipeline_mode<synchronous>, transform_indices = @transform_4, window_bounds = array<i64: 9, 128, 128>}, {pipeline_mode = #tpu.pipeline_mode<synchronous>, transform_indices = @transform_5, window_bounds = array<i64: 1, 128>}, {pipeline_mode = #tpu.pipeline_mode<synchronous>, transform_indices = @transform_6, window_bounds = array<i64: 128, 128>}, {pipeline_mode = #tpu.pipeline_mode<synchronous>, transform_indices = @transform_7, window_bounds = array<i64: 1, 128>}, {transform_indices = @transform_8, window_bounds = array<i64: 1, 8, 128>}]} {
    %c0 = arith.constant 0 : index
    %c0_0 = arith.constant 0 : index
    %c0_1 = arith.constant 0 : index
    %0 = vector.load %arg1[%c0, %c0_0, %c0_1] : memref<1x256x128xbf16, #tpu.memory_space<vmem>>, vector<1x256x128xbf16>
    %1 = vector.shape_cast %0 : vector<1x256x128xbf16> to vector<256x128xbf16>
    %c0_2 = arith.constant 0 : index
    %c0_3 = arith.constant 0 : index
    %2 = vector.load %arg3[%c0_2, %c0_3] : memref<128x128xbf16, #tpu.memory_space<vmem>>, vector<128x128xbf16>
    %cst = arith.constant dense<0.000000e+00> : vector<256x128xf32>
    %3 = tpu.matmul %1, %2, %cst {dimension_numbers = #tpu.dot_dimension_numbers<[1], [0], [0], [1], [0, 0, 1, 1], [], []>} : vector<256x128xbf16>, vector<128x128xbf16>, vector<256x128xf32> -> vector<256x128xf32>
    %c0_4 = arith.constant 0 : index
    %c0_5 = arith.constant 0 : index
    %4 = vector.load %arg4[%c0_4, %c0_5] : memref<1x128xf32, #tpu.memory_space<vmem>>, vector<1x128xf32>
    %5 = vector.broadcast %4 : vector<1x128xf32> to vector<256x128xf32>
    %6 = arith.addf %3, %5 : vector<256x128xf32>
    %cst_6 = arith.constant 0.000000e+00 : f32
    %7 = vector.broadcast %cst_6 : f32 to vector<256x128xf32>
    %8 = arith.cmpf ogt, %6, %7 : vector<256x128xf32>
    %cst_7 = arith.constant 1.000000e-01 : f32
    %9 = vector.broadcast %cst_7 : f32 to vector<256x128xf32>
    %10 = arith.mulf %9, %6 : vector<256x128xf32>
    %11 = arith.select %8, %6, %10 : vector<256x128xi1>, vector<256x128xf32>
    %12 = arith.truncf %11 : vector<256x128xf32> to vector<256x128xbf16>
    %13 = vector.shape_cast %12 : vector<256x128xbf16> to vector<1x2x2x8x8x128xbf16>
    %cst_8 = arith.constant 0.000000e+00 : bf16
    %14 = vector.broadcast %cst_8 : bf16 to vector<1x1x8x128xbf16>
    %cst_9 = arith.constant 0.000000e+00 : bf16
    %15 = vector.broadcast %cst_9 : bf16 to vector<1x8x1x128xbf16>
    %16 = vector.extract_strided_slice %13 {offsets = [0, 1, 1, 0, 0, 0], sizes = [1, 1, 1, 8, 8, 128], strides = [1, 1, 1, 1, 1, 1]} : vector<1x2x2x8x8x128xbf16> to vector<1x1x1x8x8x128xbf16>
    %17 = vector.shape_cast %16 : vector<1x1x1x8x8x128xbf16> to vector<1x8x8x128xbf16>
    %18 = vector.extract_strided_slice %17 {offsets = [0, 0, 0, 0], sizes = [1, 7, 8, 128], strides = [1, 1, 1, 1]} : vector<1x8x8x128xbf16> to vector<1x7x8x128xbf16>
    %19 = tpu.concatenate %14, %18 in 1 : vector<1x1x8x128xbf16>, vector<1x7x8x128xbf16> -> vector<1x8x8x128xbf16>
    %20 = vector.extract_strided_slice %19 {offsets = [0, 0, 0, 0], sizes = [1, 8, 7, 128], strides = [1, 1, 1, 1]} : vector<1x8x8x128xbf16> to vector<1x8x7x128xbf16>
    %21 = tpu.concatenate %15, %20 in 2 : vector<1x8x1x128xbf16>, vector<1x8x7x128xbf16> -> vector<1x8x8x128xbf16>
    %22 = vector.shape_cast %21 : vector<1x8x8x128xbf16> to vector<64x128xbf16>
    %c0_10 = arith.constant 0 : index
    %c0_11 = arith.constant 0 : index
    %c0_12 = arith.constant 0 : index
    %23 = vector.load %arg5[%c0_10, %c0_11, %c0_12] : memref<9x128x128xbf16, #tpu.memory_space<vmem>>, vector<1x128x128xbf16>
    %24 = vector.shape_cast %23 : vector<1x128x128xbf16> to vector<128x128xbf16>
    %cst_13 = arith.constant dense<0.000000e+00> : vector<64x128xf32>
    %25 = tpu.matmul %22, %24, %cst_13 {dimension_numbers = #tpu.dot_dimension_numbers<[1], [0], [0], [1], [0, 0, 1, 1], [], []>} : vector<64x128xbf16>, vector<128x128xbf16>, vector<64x128xf32> -> vector<64x128xf32>
    %26 = vector.extract_strided_slice %13 {offsets = [0, 1, 0, 0, 0, 0], sizes = [1, 1, 1, 8, 8, 128], strides = [1, 1, 1, 1, 1, 1]} : vector<1x2x2x8x8x128xbf16> to vector<1x1x1x8x8x128xbf16>
    %27 = vector.shape_cast %26 : vector<1x1x1x8x8x128xbf16> to vector<1x8x8x128xbf16>
    %28 = vector.extract_strided_slice %27 {offsets = [0, 0, 0, 0], sizes = [1, 7, 8, 128], strides = [1, 1, 1, 1]} : vector<1x8x8x128xbf16> to vector<1x7x8x128xbf16>
    %29 = tpu.concatenate %14, %28 in 1 : vector<1x1x8x128xbf16>, vector<1x7x8x128xbf16> -> vector<1x8x8x128xbf16>
    %30 = vector.shape_cast %29 : vector<1x8x8x128xbf16> to vector<64x128xbf16>
    %c1 = arith.constant 1 : index
    %c0_14 = arith.constant 0 : index
    %c0_15 = arith.constant 0 : index
    %31 = vector.load %arg5[%c1, %c0_14, %c0_15] : memref<9x128x128xbf16, #tpu.memory_space<vmem>>, vector<1x128x128xbf16>
    %32 = vector.shape_cast %31 : vector<1x128x128xbf16> to vector<128x128xbf16>
    %cst_16 = arith.constant dense<0.000000e+00> : vector<64x128xf32>
    %33 = tpu.matmul %30, %32, %cst_16 {dimension_numbers = #tpu.dot_dimension_numbers<[1], [0], [0], [1], [0, 0, 1, 1], [], []>} : vector<64x128xbf16>, vector<128x128xbf16>, vector<64x128xf32> -> vector<64x128xf32>
    %34 = arith.addf %25, %33 : vector<64x128xf32>
    %35 = vector.extract_strided_slice %13 {offsets = [0, 1, 1, 0, 0, 0], sizes = [1, 1, 1, 8, 8, 128], strides = [1, 1, 1, 1, 1, 1]} : vector<1x2x2x8x8x128xbf16> to vector<1x1x1x8x8x128xbf16>
    %36 = vector.shape_cast %35 : vector<1x1x1x8x8x128xbf16> to vector<1x8x8x128xbf16>
    %37 = vector.extract_strided_slice %36 {offsets = [0, 0, 0, 0], sizes = [1, 7, 8, 128], strides = [1, 1, 1, 1]} : vector<1x8x8x128xbf16> to vector<1x7x8x128xbf16>
    %38 = tpu.concatenate %14, %37 in 1 : vector<1x1x8x128xbf16>, vector<1x7x8x128xbf16> -> vector<1x8x8x128xbf16>
    %39 = vector.shape_cast %38 : vector<1x8x8x128xbf16> to vector<64x128xbf16>
    %c2 = arith.constant 2 : index
    %c0_17 = arith.constant 0 : index
    %c0_18 = arith.constant 0 : index
    %40 = vector.load %arg5[%c2, %c0_17, %c0_18] : memref<9x128x128xbf16, #tpu.memory_space<vmem>>, vector<1x128x128xbf16>
    %41 = vector.shape_cast %40 : vector<1x128x128xbf16> to vector<128x128xbf16>
    %cst_19 = arith.constant dense<0.000000e+00> : vector<64x128xf32>
    %42 = tpu.matmul %39, %41, %cst_19 {dimension_numbers = #tpu.dot_dimension_numbers<[1], [0], [0], [1], [0, 0, 1, 1], [], []>} : vector<64x128xbf16>, vector<128x128xbf16>, vector<64x128xf32> -> vector<64x128xf32>
    %43 = arith.addf %34, %42 : vector<64x128xf32>
    %44 = vector.extract_strided_slice %13 {offsets = [0, 0, 1, 0, 0, 0], sizes = [1, 1, 1, 8, 8, 128], strides = [1, 1, 1, 1, 1, 1]} : vector<1x2x2x8x8x128xbf16> to vector<1x1x1x8x8x128xbf16>
    %45 = vector.shape_cast %44 : vector<1x1x1x8x8x128xbf16> to vector<1x8x8x128xbf16>
    %46 = vector.extract_strided_slice %45 {offsets = [0, 0, 0, 0], sizes = [1, 8, 7, 128], strides = [1, 1, 1, 1]} : vector<1x8x8x128xbf16> to vector<1x8x7x128xbf16>
    %47 = tpu.concatenate %15, %46 in 2 : vector<1x8x1x128xbf16>, vector<1x8x7x128xbf16> -> vector<1x8x8x128xbf16>
    %48 = vector.shape_cast %47 : vector<1x8x8x128xbf16> to vector<64x128xbf16>
    %c3 = arith.constant 3 : index
    %c0_20 = arith.constant 0 : index
    %c0_21 = arith.constant 0 : index
    %49 = vector.load %arg5[%c3, %c0_20, %c0_21] : memref<9x128x128xbf16, #tpu.memory_space<vmem>>, vector<1x128x128xbf16>
    %50 = vector.shape_cast %49 : vector<1x128x128xbf16> to vector<128x128xbf16>
    %cst_22 = arith.constant dense<0.000000e+00> : vector<64x128xf32>
    %51 = tpu.matmul %48, %50, %cst_22 {dimension_numbers = #tpu.dot_dimension_numbers<[1], [0], [0], [1], [0, 0, 1, 1], [], []>} : vector<64x128xbf16>, vector<128x128xbf16>, vector<64x128xf32> -> vector<64x128xf32>
    %52 = arith.addf %43, %51 : vector<64x128xf32>
    %53 = vector.extract_strided_slice %13 {offsets = [0, 0, 0, 0, 0, 0], sizes = [1, 1, 1, 8, 8, 128], strides = [1, 1, 1, 1, 1, 1]} : vector<1x2x2x8x8x128xbf16> to vector<1x1x1x8x8x128xbf16>
    %54 = vector.shape_cast %53 : vector<1x1x1x8x8x128xbf16> to vector<1x8x8x128xbf16>
    %55 = vector.shape_cast %54 : vector<1x8x8x128xbf16> to vector<64x128xbf16>
    %c4 = arith.constant 4 : index
    %c0_23 = arith.constant 0 : index
    %c0_24 = arith.constant 0 : index
    %56 = vector.load %arg5[%c4, %c0_23, %c0_24] : memref<9x128x128xbf16, #tpu.memory_space<vmem>>, vector<1x128x128xbf16>
    %57 = vector.shape_cast %56 : vector<1x128x128xbf16> to vector<128x128xbf16>
    %cst_25 = arith.constant dense<0.000000e+00> : vector<64x128xf32>
    %58 = tpu.matmul %55, %57, %cst_25 {dimension_numbers = #tpu.dot_dimension_numbers<[1], [0], [0], [1], [0, 0, 1, 1], [], []>} : vector<64x128xbf16>, vector<128x128xbf16>, vector<64x128xf32> -> vector<64x128xf32>
    %59 = arith.addf %52, %58 : vector<64x128xf32>
    %60 = vector.extract_strided_slice %13 {offsets = [0, 0, 1, 0, 0, 0], sizes = [1, 1, 1, 8, 8, 128], strides = [1, 1, 1, 1, 1, 1]} : vector<1x2x2x8x8x128xbf16> to vector<1x1x1x8x8x128xbf16>
    %61 = vector.shape_cast %60 : vector<1x1x1x8x8x128xbf16> to vector<1x8x8x128xbf16>
    %62 = vector.shape_cast %61 : vector<1x8x8x128xbf16> to vector<64x128xbf16>
    %c5 = arith.constant 5 : index
    %c0_26 = arith.constant 0 : index
    %c0_27 = arith.constant 0 : index
    %63 = vector.load %arg5[%c5, %c0_26, %c0_27] : memref<9x128x128xbf16, #tpu.memory_space<vmem>>, vector<1x128x128xbf16>
    %64 = vector.shape_cast %63 : vector<1x128x128xbf16> to vector<128x128xbf16>
    %cst_28 = arith.constant dense<0.000000e+00> : vector<64x128xf32>
    %65 = tpu.matmul %62, %64, %cst_28 {dimension_numbers = #tpu.dot_dimension_numbers<[1], [0], [0], [1], [0, 0, 1, 1], [], []>} : vector<64x128xbf16>, vector<128x128xbf16>, vector<64x128xf32> -> vector<64x128xf32>
    %66 = arith.addf %59, %65 : vector<64x128xf32>
    %67 = vector.extract_strided_slice %13 {offsets = [0, 1, 1, 0, 0, 0], sizes = [1, 1, 1, 8, 8, 128], strides = [1, 1, 1, 1, 1, 1]} : vector<1x2x2x8x8x128xbf16> to vector<1x1x1x8x8x128xbf16>
    %68 = vector.shape_cast %67 : vector<1x1x1x8x8x128xbf16> to vector<1x8x8x128xbf16>
    %69 = vector.extract_strided_slice %68 {offsets = [0, 0, 0, 0], sizes = [1, 8, 7, 128], strides = [1, 1, 1, 1]} : vector<1x8x8x128xbf16> to vector<1x8x7x128xbf16>
    %70 = tpu.concatenate %15, %69 in 2 : vector<1x8x1x128xbf16>, vector<1x8x7x128xbf16> -> vector<1x8x8x128xbf16>
    %71 = vector.shape_cast %70 : vector<1x8x8x128xbf16> to vector<64x128xbf16>
    %c6 = arith.constant 6 : index
    %c0_29 = arith.constant 0 : index
    %c0_30 = arith.constant 0 : index
    %72 = vector.load %arg5[%c6, %c0_29, %c0_30] : memref<9x128x128xbf16, #tpu.memory_space<vmem>>, vector<1x128x128xbf16>
    %73 = vector.shape_cast %72 : vector<1x128x128xbf16> to vector<128x128xbf16>
    %cst_31 = arith.constant dense<0.000000e+00> : vector<64x128xf32>
    %74 = tpu.matmul %71, %73, %cst_31 {dimension_numbers = #tpu.dot_dimension_numbers<[1], [0], [0], [1], [0, 0, 1, 1], [], []>} : vector<64x128xbf16>, vector<128x128xbf16>, vector<64x128xf32> -> vector<64x128xf32>
    %75 = arith.addf %66, %74 : vector<64x128xf32>
    %76 = vector.extract_strided_slice %13 {offsets = [0, 1, 0, 0, 0, 0], sizes = [1, 1, 1, 8, 8, 128], strides = [1, 1, 1, 1, 1, 1]} : vector<1x2x2x8x8x128xbf16> to vector<1x1x1x8x8x128xbf16>
    %77 = vector.shape_cast %76 : vector<1x1x1x8x8x128xbf16> to vector<1x8x8x128xbf16>
    %78 = vector.shape_cast %77 : vector<1x8x8x128xbf16> to vector<64x128xbf16>
    %c7 = arith.constant 7 : index
    %c0_32 = arith.constant 0 : index
    %c0_33 = arith.constant 0 : index
    %79 = vector.load %arg5[%c7, %c0_32, %c0_33] : memref<9x128x128xbf16, #tpu.memory_space<vmem>>, vector<1x128x128xbf16>
    %80 = vector.shape_cast %79 : vector<1x128x128xbf16> to vector<128x128xbf16>
    %cst_34 = arith.constant dense<0.000000e+00> : vector<64x128xf32>
    %81 = tpu.matmul %78, %80, %cst_34 {dimension_numbers = #tpu.dot_dimension_numbers<[1], [0], [0], [1], [0, 0, 1, 1], [], []>} : vector<64x128xbf16>, vector<128x128xbf16>, vector<64x128xf32> -> vector<64x128xf32>
    %82 = arith.addf %75, %81 : vector<64x128xf32>
    %83 = vector.extract_strided_slice %13 {offsets = [0, 1, 1, 0, 0, 0], sizes = [1, 1, 1, 8, 8, 128], strides = [1, 1, 1, 1, 1, 1]} : vector<1x2x2x8x8x128xbf16> to vector<1x1x1x8x8x128xbf16>
    %84 = vector.shape_cast %83 : vector<1x1x1x8x8x128xbf16> to vector<1x8x8x128xbf16>
    %85 = vector.shape_cast %84 : vector<1x8x8x128xbf16> to vector<64x128xbf16>
    %c8 = arith.constant 8 : index
    %c0_35 = arith.constant 0 : index
    %c0_36 = arith.constant 0 : index
    %86 = vector.load %arg5[%c8, %c0_35, %c0_36] : memref<9x128x128xbf16, #tpu.memory_space<vmem>>, vector<1x128x128xbf16>
    %87 = vector.shape_cast %86 : vector<1x128x128xbf16> to vector<128x128xbf16>
    %cst_37 = arith.constant dense<0.000000e+00> : vector<64x128xf32>
    %88 = tpu.matmul %85, %87, %cst_37 {dimension_numbers = #tpu.dot_dimension_numbers<[1], [0], [0], [1], [0, 0, 1, 1], [], []>} : vector<64x128xbf16>, vector<128x128xbf16>, vector<64x128xf32> -> vector<64x128xf32>
    %89 = arith.addf %82, %88 : vector<64x128xf32>
    %c0_38 = arith.constant 0 : index
    %c0_39 = arith.constant 0 : index
    %90 = vector.load %arg6[%c0_38, %c0_39] : memref<1x128xf32, #tpu.memory_space<vmem>>, vector<1x128xf32>
    %91 = vector.broadcast %90 : vector<1x128xf32> to vector<64x128xf32>
    %92 = arith.addf %89, %91 : vector<64x128xf32>
    %cst_40 = arith.constant 0.000000e+00 : f32
    %93 = vector.broadcast %cst_40 : f32 to vector<64x128xf32>
    %94 = arith.cmpf ogt, %92, %93 : vector<64x128xf32>
    %cst_41 = arith.constant 1.000000e-01 : f32
    %95 = vector.broadcast %cst_41 : f32 to vector<64x128xf32>
    %96 = arith.mulf %95, %92 : vector<64x128xf32>
    %97 = arith.select %94, %92, %96 : vector<64x128xi1>, vector<64x128xf32>
    %98 = arith.truncf %97 : vector<64x128xf32> to vector<64x128xbf16>
    %c0_42 = arith.constant 0 : index
    %c0_43 = arith.constant 0 : index
    %99 = vector.load %arg7[%c0_42, %c0_43] : memref<128x128xbf16, #tpu.memory_space<vmem>>, vector<128x128xbf16>
    %cst_44 = arith.constant dense<0.000000e+00> : vector<64x128xf32>
    %100 = tpu.matmul %98, %99, %cst_44 {dimension_numbers = #tpu.dot_dimension_numbers<[1], [0], [0], [1], [0, 0, 1, 1], [], []>} : vector<64x128xbf16>, vector<128x128xbf16>, vector<64x128xf32> -> vector<64x128xf32>
    %c0_45 = arith.constant 0 : index
    %c0_46 = arith.constant 0 : index
    %101 = vector.load %arg8[%c0_45, %c0_46] : memref<1x128xf32, #tpu.memory_space<vmem>>, vector<1x128xf32>
    %102 = vector.broadcast %101 : vector<1x128xf32> to vector<64x128xf32>
    %103 = arith.addf %100, %102 : vector<64x128xf32>
    %c0_47 = arith.constant 0 : index
    %c0_48 = arith.constant 0 : index
    %c0_49 = arith.constant 0 : index
    %104 = vector.load %arg2[%c0_47, %c0_48, %c0_49] : memref<1x64x128xf32, #tpu.memory_space<vmem>>, vector<1x64x128xf32>
    %105 = vector.shape_cast %104 : vector<1x64x128xf32> to vector<64x128xf32>
    %106 = arith.subf %103, %105 : vector<64x128xf32>
    %107 = arith.mulf %106, %106 : vector<64x128xf32>
    %108 = vector.shape_cast %107 : vector<64x128xf32> to vector<1x8x8x128xf32>
    %cst_50 = arith.constant dense<0.000000e+00> : vector<1x8x128xf32>
    %109 = vector.multi_reduction <add>, %108, %cst_50 [1] : vector<1x8x8x128xf32> to vector<1x8x128xf32>
    %c0_51 = arith.constant 0 : index
    %c0_52 = arith.constant 0 : index
    %c0_53 = arith.constant 0 : index
    %110 = vector.load %arg9[%c0_51, %c0_52, %c0_53] : memref<1x8x128xf32, #tpu.memory_space<vmem>>, vector<1x8x128xf32>
    tpu.vector_store %arg9[%c0_51, %c0_52, %c0_53], %109 {strides = array<i32>} : memref<1x8x128xf32, #tpu.memory_space<vmem>>, vector<1x8x128xf32>,
    return
  }
  func.func @transform_0(%arg0: i32) -> (i32, i32, i32) {
    %c0_i32 = arith.constant 0 : i32
    %c0_i32_0 = arith.constant 0 : i32
    %c0_i32_1 = arith.constant 0 : i32
    return %arg0, %c0_i32, %c0_i32_0 : i32, i32, i32
  }
  func.func @transform_1(%arg0: i32) -> (i32, i32, i32) {
    %c0_i32 = arith.constant 0 : i32
    %c0_i32_0 = arith.constant 0 : i32
    %c0_i32_1 = arith.constant 0 : i32
    return %arg0, %c0_i32, %c0_i32_0 : i32, i32, i32
  }
  func.func @transform_2(%arg0: i32) -> (i32, i32) {
    %c0_i32 = arith.constant 0 : i32
    %c0_i32_0 = arith.constant 0 : i32
    %c0_i32_1 = arith.constant 0 : i32
    return %c0_i32, %c0_i32_0 : i32, i32
  }
  func.func @transform_3(%arg0: i32) -> (i32, i32) {
    %c0_i32 = arith.constant 0 : i32
    %c0_i32_0 = arith.constant 0 : i32
    %c0_i32_1 = arith.constant 0 : i32
    return %c0_i32, %c0_i32_0 : i32, i32
  }
  func.func @transform_4(%arg0: i32) -> (i32, i32, i32) {
    %c0_i32 = arith.constant 0 : i32
    %c0_i32_0 = arith.constant 0 : i32
    %c0_i32_1 = arith.constant 0 : i32
    %c0_i32_2 = arith.constant 0 : i32
    return %c0_i32, %c0_i32_0, %c0_i32_1 : i32, i32, i32
  }
  func.func @transform_5(%arg0: i32) -> (i32, i32) {
    %c0_i32 = arith.constant 0 : i32
    %c0_i32_0 = arith.constant 0 : i32
    %c0_i32_1 = arith.constant 0 : i32
    return %c0_i32, %c0_i32_0 : i32, i32
  }
  func.func @transform_6(%arg0: i32) -> (i32, i32) {
    %c0_i32 = arith.constant 0 : i32
    %c0_i32_0 = arith.constant 0 : i32
    %c0_i32_1 = arith.constant 0 : i32
    return %c0_i32, %c0_i32_0 : i32, i32
  }
  func.func @transform_7(%arg0: i32) -> (i32, i32) {
    %c0_i32 = arith.constant 0 : i32
    %c0_i32_0 = arith.constant 0 : i32
    %c0_i32_1 = arith.constant 0 : i32
    return %c0_i32, %c0_i32_0 : i32, i32
  }
  func.func @transform_8(%arg0: i32) -> (i32, i32, i32) {
    %c0_i32 = arith.constant 0 : i32
    %c0_i32_0 = arith.constant 0 : i32
    %c0_i32_1 = arith.constant 0 : i32
    return %arg0, %c0_i32, %c0_i32_0 : i32, i32, i32
  }
}

</mosaic_0001>

<bundles_post_ra>
// kernel: model_forward.1
= control target key start
LH: loop header
LB: loop body
LE: loop exit
PB: predicated region body
PF: predicated region fallthrough
CT: control target
= control target key end

     0   :  { %s3038_s27 = smov 0   ;;  %s3745_s0 = inlined_call_operand.vmem [shape: bf16[2,256,128], index: 0, kind: input, shape index: {}]   ;;  %s3746_s1 = inlined_call_operand.vmem [shape: f32[2,64,128], index: 1, kind: input, shape index: {}]   ;;  %s3747_s2 = inlined_call_operand.vmem [shape: bf16[128,128], index: 2, kind: input, shape index: {}]   ;;  %s3748_s3 = inlined_call_operand.vmem [shape: f32[1,128], index: 3, kind: input, shape index: {}]   ;;  %s3749_s4 = inlined_call_operand.vmem [shape: bf16[9,128,128], index: 4, kind: input, shape index: {}]   ;;  %s3750_s5 = inlined_call_operand.vmem [shape: f32[1,128], index: 5, kind: input, shape index: {}]   ;;  %s3751_s6 = inlined_call_operand.vmem [shape: bf16[128,128], index: 6, kind: input, shape index: {}]   ;;  %s3752_s7 = inlined_call_operand.vmem [shape: f32[1,128], index: 7, kind: input, shape index: {}]   ;;  %s3753_s8 = inlined_call_operand.vmem [shape: f32[2,8,128], index: 8, kind: output, shape index: {}]  }
   0x1 LB: > { %s2294_s28 = sadd.s32 4294967295, %s2990_s27   ;;  %p2298_p0 = scmp.ge.s32.totalorder %s2990_s27, 1  ;;  %s2990_s27 = sphi %s3038_s27, %s18_s27  }
   0x2   : > { %p272_p1 = scmp.lt.s32.totalorder %s2990_s27, 3 }
   0x4   : > { %p273_p2 = pnand %p2298_p0, %p272_p1 }
   0x5   : > { %p310_p3 = scmp.lt.s32.totalorder (!%p273_p2), %s2294_s28, 1 }
   0x6   : > { %276 = sbr.rel (%p273_p2) target bundleno = 849 (0x351), region = 52 }
   0xb   : > { %v2875_v0 = vld [vmem:[%s3747_s2 + $0x38] sm:$0xff]  ;;  %v2874_v1 = vld [vmem:[%s3747_s2 + $0x30] sm:$0xff]  ;;  %v2873_v2 = vld [vmem:[%s3747_s2 + $0x28] sm:$0xff]  ;;  %s3767_s28 = smov (!%p310_p3, %s2294_s28), 1  ;;  %vm802_vm10 = vcmask 1040384  }
   0xc   : > { %521 = vmatpush.bf16.msra.mxu0 %v2875_v0  ;;  %2956 = vmatpush.bf16.msra.mxu2 %v2875_v0  ;;  %v2872_v3 = vld [vmem:[%s3747_s2 + $0x20] sm:$0xff]  ;;  %v2871_v4 = vld [vmem:[%s3747_s2 + $0x18] sm:$0xff]  ;;  %v2870_v5 = vld [vmem:[%s3747_s2 + $0x10] sm:$0xff]  ;;  %s2850_s21 = sshll.u32 %s3767_s28, 7  ;;  %vm803_vm11 = vsmask.f32 256 }
   0xd   : > { %v2869_v6 = vld [vmem:[%s3747_s2 + $0x8] sm:$0xff]  ;;  %v2868_v7 = vld [vmem:[%s3747_s2] sm:$0xff]  ;;  %s3076_s26 = scalar_lea.vmem %s3745_s0, %s2850_s21  ;;  %vm3153_vm13 = vmand %vm802_vm10, %vm803_vm11  ;;  %s2851_s11 = sshll.u32 %s3767_s28, 6 }
   0xe   : > { %v2852_v8 = vld [vmem:[%s3076_s26] sm:$0xff]  ;;  %v2853_v9 = vld [vmem:[%s3076_s26 + $0x8] sm:$0xff]  ;;  %v2854_v10 = vld [vmem:[%s3076_s26 + $0x10] sm:$0xff]  ;;  %s3728_s16 = scalar_lea.vmem %s3746_s1, %s2851_s11  ;;  %s2303_s17 = sshll.u32 %s3767_s28, 3 }
   0xf   : > { %v2855_v11 = vld [vmem:[%s3076_s26 + $0x18] sm:$0xff]  ;;  %v2856_v12 = vld [vmem:[%s3076_s26 + $0x20] sm:$0xff]  ;;  %v2857_v13 = vld [vmem:[%s3076_s26 + $0x28] sm:$0xff]  ;;  %s323_s20 = scalar_lea.vmem %s3753_s8, %s2303_s17 }
  0x10   : > { %522 = vmatpush.bf16.msra.mxu0 %v2874_v1  ;;  %2957 = vmatpush.bf16.msra.mxu2 %v2874_v1  ;;  %v2858_v14 = vld [vmem:[%s3076_s26 + $0x30] sm:$0xff]  ;;  %v2859_v15 = vld [vmem:[%s3076_s26 + $0x38] sm:$0xff]  ;;  %v3089_v16 = vld [vmem:[%s3748_s3] ss:$0 sm:$0xff] }
  0x11   : > { %v2860_v17 = vld [vmem:[%s3076_s26 + $0x40] sm:$0xff]  ;;  %v2861_v28 = vld [vmem:[%s3076_s26 + $0x48] sm:$0xff]  ;;  %v2862_v42 = vld [vmem:[%s3076_s26 + $0x50] sm:$0xff] }
  0x12   : > { %v2866_v49 = vld [vmem:[%s3076_s26 + $0x70] sm:$0xff]  ;;  %v2863_v57 = vld [vmem:[%s3076_s26 + $0x58] sm:$0xff] }
  0x13   : > { %v2867_v0 = vld [vmem:[%s3076_s26 + $0x78] sm:$0xff] }
  0x14   : > { %523 = vmatpush.bf16.msra.mxu0 %v2873_v2  ;;  %2958 = vmatpush.bf16.msra.mxu2 %v2873_v2 }
  0x18   : > { %524 = vmatpush.bf16.msra.mxu0 %v2872_v3  ;;  %2959 = vmatpush.bf16.msra.mxu2 %v2872_v3 }
  0x1c   : > { %525 = vmatpush.bf16.msra.mxu0 %v2871_v4  ;;  %2960 = vmatpush.bf16.msra.mxu2 %v2871_v4 }
  0x20   : > { %526 = vmatpush.bf16.msra.mxu0 %v2870_v5  ;;  %2961 = vmatpush.bf16.msra.mxu2 %v2870_v5 }
  0x24   : > { %527 = vmatpush.bf16.msra.mxu0 %v2869_v6  ;;  %2962 = vmatpush.bf16.msra.mxu2 %v2869_v6 }
  0x28   : > { %528 = vmatpush.bf16.msra.mxu0 %v2868_v7  ;;  %2963 = vmatpush.bf16.msra.mxu2 %v2868_v7 }
  0x2b   : > { %529 = vmatmul.bf16.vlgmr.msra.gmra.mxu0 %v2852_v8  ;;  %599 = vmatmul.bf16.vlgmr.msra.gmra.mxu2 %v2866_v49  ;;  %v2864_v8 = vld [vmem:[%s3076_s26 + $0x60] sm:$0xff] }
  0x3b   : > { %534 = vmatmul.bf16.gmra.mxu0 %v2853_v9  ;;  %604 = vmatmul.bf16.gmra.mxu2 %v2867_v0 }
  0x4b   : > { %539 = vmatmul.bf16.gmra.mxu0 %v2854_v10 }
  0x5b   : > { %544 = vmatmul.bf16.gmra.mxu0 %v2855_v11 }
  0x6b   : > { %549 = vmatmul.bf16.gmra.mxu0 %v2856_v12 }
  0x7b   : > { %554 = vmatmul.bf16.gmra.mxu0 %v2857_v13 }
  0x8b   : > { %559 = vmatmul.bf16.gmra.mxu0 %v2858_v14 }
  0x9b   : > { %564 = vmatmul.bf16.gmra.mxu0 %v2859_v15 }
  0xa8   : > { %v530_v18 = vpop.f32.mrf.mxu0 }
  0xa9   : > { %v531_v19 = vadd.f32 %v3089_v16, %v530_v18 }
  0xab   : > { %569 = vmatmul.bf16.gmra.mxu0 %v2860_v17  ;;  %v642_v20 = vmul.f32 0.1, %v531_v19  ;;  %vm610_vm0 = vcmp.gt.f32.partialorder %v531_v19, 0.0 }
  0xad   : > { %v674_v22 = vsel %vm610_vm0, %v531_v19, %v642_v20 }
  0xae   : > { %v706_v25 = vpack.c.bf16 %v674_v22, %v674_v22 }
  0xb0   : > { %v532_v21 = vpop.f32.mrf.mxu0  ;;  %v3095_v29 = vunpack.c.l.b16 %v706_v25 }
  0xb1   : > { %v533_v23 = vadd.f32 %v3089_v16, %v532_v21 }
  0xb3   : > { %vm611_vm1 = vcmp.gt.f32.partialorder %v533_v23, 0.0  ;;  %v643_v24 = vmul.f32 0.1, %v533_v23 }
  0xb5   : > { %v675_v26 = vsel %vm611_vm1, %v533_v23, %v643_v24  ;;  %v2891_v23 = vld [vmem:[%s3749_s4 + $0x78] sm:$0xff] }
  0xb6   : > { %v707_v27 = vpack.c.bf16 %v675_v26, %v675_v26  ;;  %918 = vmatpush.bf16.msra.mxu1 %v2891_v23  ;;  %2964 = vmatpush.bf16.msra.mxu3 %v2891_v23 }
  0xb8   : > { %v3097_v30 = vunpack.c.l.b16 %v707_v27  ;;  %v535_v31 = vpop.f32.mrf.mxu0  ;;  %v2865_v27 = vld [vmem:[%s3076_s26 + $0x68] sm:$0xff] }
  0xb9   : > { %v536_v32 = vadd.f32 %v3089_v16, %v535_v31 }
  0xba   : > { %v1427_v33 = vpack.c.b16 %v3097_v30, %v3095_v29  ;;  %v2934_v29 = vld [vmem:[%s3749_s4 + $0x1d0] sm:$0xff] }
  0xbb   : > { %574 = vmatmul.bf16.gmra.mxu0 %v2861_v28  ;;  %v644_v34 = vmul.f32 0.1, %v536_v32  ;;  %vm612_vm2 = vcmp.gt.f32.partialorder %v536_v32, 0.0  ;;  %v2890_v28 = vld [vmem:[%s3749_s4 + $0x70] sm:$0xff] }
  0xbc   : > { %919 = vmatpush.bf16.msra.mxu1 %v2890_v28  ;;  %2965 = vmatpush.bf16.msra.mxu3 %v2890_v28 }
  0xbd   : > { %v676_v37 = vsel %vm612_vm2, %v536_v32, %v644_v34 }
  0xbe   : > { %v708_v39 = vpack.c.bf16 %v676_v37, %v676_v37 }
  0xc0   : > { %v537_v35 = vpop.f32.mrf.mxu0  ;;  %v3104_v44 = vunpack.c.l.b16 %v708_v39 }
  0xc1   : > { %v538_v36 = vadd.f32 %v3089_v16, %v537_v35 }
  0xc3   : > { %vm613_vm3 = vcmp.gt.f32.partialorder %v538_v36, 0.0  ;;  %v645_v38 = vmul.f32 0.1, %v538_v36 }
  0xc5   : > { %v677_v40 = vsel %vm613_vm3, %v538_v36, %v645_v38 }
  0xc6   : > { %v709_v41 = vpack.c.bf16 %v677_v40, %v677_v40  ;;  %v2889_v40 = vld [vmem:[%s3749_s4 + $0x68] sm:$0xff] }
  0xc7   : > { %920 = vmatpush.bf16.msra.mxu1 %v2889_v40  ;;  %2966 = vmatpush.bf16.msra.mxu3 %v2889_v40 }
  0xc8   : > { %v540_v43 = vpop.f32.mrf.mxu0  ;;  %v3106_v45 = vunpack.c.l.b16 %v709_v41 }
  0xc9   : > { %v541_v46 = vadd.f32 %v3089_v16, %v540_v43 }
  0xca   : > { %v1428_v47 = vpack.c.b16 %v3106_v45, %v3104_v44  ;;  %v2932_v44 = vld [vmem:[%s3749_s4 + $0x1c0] sm:$0xff] }
  0xcb   : > { %579 = vmatmul.bf16.gmra.mxu0 %v2862_v42  ;;  %v646_v48 = vmul.f32 0.1, %v541_v46  ;;  %vm614_vm4 = vcmp.gt.f32.partialorder %v541_v46, 0.0 }
  0xcd   : > { %v678_v52 = vsel %vm614_vm4, %v541_v46, %v646_v48  ;;  %v2933_v46 = vld [vmem:[%s3749_s4 + $0x1c8] sm:$0xff] }
  0xce   : > { %v710_v54 = vpack.c.bf16 %v678_v52, %v678_v52 }
  0xd0   : > { %v542_v50 = vpop.f32.mrf.mxu0  ;;  %v3114_v59 = vunpack.c.l.b16 %v710_v54 }
  0xd1   : > { %v543_v51 = vadd.f32 %v3089_v16, %v542_v50 }
  0xd3   : > { %vm615_vm5 = vcmp.gt.f32.partialorder %v543_v51, 0.0  ;;  %v647_v53 = vmul.f32 0.1, %v543_v51 }
  0xd5   : > { %v679_v55 = vsel %vm615_vm5, %v543_v51, %v647_v53  ;;  %v2888_v51 = vld [vmem:[%s3749_s4 + $0x60] sm:$0xff] }
  0xd6   : > { %v711_v56 = vpack.c.bf16 %v679_v55, %v679_v55  ;;  %921 = vmatpush.bf16.msra.mxu1 %v2888_v51  ;;  %2967 = vmatpush.bf16.msra.mxu3 %v2888_v51 }
  0xd8   : > { %v545_v58 = vpop.f32.mrf.mxu0  ;;  %v3116_v60 = vunpack.c.l.b16 %v711_v56 }
  0xd9   : > { %v546_v61 = vadd.f32 %v3089_v16, %v545_v58 }
  0xda   : > { %v1429_v62 = vpack.c.b16 %v3116_v60, %v3114_v59 }
  0xdb   : > { %584 = vmatmul.bf16.gmra.mxu0 %v2863_v57  ;;  %v648_v63 = vmul.f32 0.1, %v546_v61  ;;  %vm616_vm6 = vcmp.gt.f32.partialorder %v546_v61, 0.0 }
  0xdd   : > { %v680_v3 = vsel %vm616_vm6, %v546_v61, %v648_v63  ;;  %v2887_v63 = vld [vmem:[%s3749_s4 + $0x58] sm:$0xff] }
  0xde   : > { %v712_v5 = vpack.c.bf16 %v680_v3, %v680_v3  ;;  %922 = vmatpush.bf16.msra.mxu1 %v2887_v63  ;;  %2968 = vmatpush.bf16.msra.mxu3 %v2887_v63 }
  0xe0   : > { %v547_v1 = vpop.f32.mrf.mxu0  ;;  %v3124_v10 = vunpack.c.l.b16 %v712_v5 }
  0xe1   : > { %v548_v2 = vadd.f32 %v3089_v16, %v547_v1 }
  0xe3   : > { %vm617_vm7 = vcmp.gt.f32.partialorder %v548_v2, 0.0  ;;  %v649_v4 = vmul.f32 0.1, %v548_v2 }
  0xe5   : > { %v681_v6 = vsel %vm617_vm7, %v548_v2, %v649_v4 }
  0xe6   : > { %v713_v7 = vpack.c.bf16 %v681_v6, %v681_v6  ;;  %v2886_v6 = vld [vmem:[%s3749_s4 + $0x50] sm:$0xff] }
  0xe7   : > { %923 = vmatpush.bf16.msra.mxu1 %v2886_v6  ;;  %2969 = vmatpush.bf16.msra.mxu3 %v2886_v6 }
  0xe8   : > { %v550_v9 = vpop.f32.mrf.mxu0  ;;  %v3126_v11 = vunpack.c.l.b16 %v713_v7 }
  0xe9   : > { %v551_v12 = vadd.f32 %v3089_v16, %v550_v9 }
  0xeb   : > { %vm618_vm8 = vcmp.gt.f32.partialorder %v551_v12, 0.0  ;;  %v650_v14 = vmul.f32 0.1, %v551_v12  ;;  %589 = vmatmul.bf16.gmra.mxu0 %v2864_v8 }
  0xed   : > { %v682_v15 = vsel %vm618_vm8, %v551_v12, %v650_v14 }
  0xee   : > { %v714_v17 = vpack.c.bf16 %v682_v15, %v682_v15 }
  0xf0   : > { %v3131_v18 = vunpack.c.l.b16 %v714_v17  ;;  %v552_v19 = vpop.f32.mrf.mxu0 }
  0xf1   : > { %v553_v20 = vadd.f32 %v3089_v16, %v552_v19 }
  0xf2   : > { %v1188_v21 = vpack.c.b16 %v3131_v18, %v3131_v18 }
  0xf3   : > { %vm619_vm9 = vcmp.gt.f32.partialorder %v553_v20, 0.0  ;;  %v651_v22 = vmul.f32 0.1, %v553_v20 }
  0xf4   : > { %v1197_v24 = vshrl.u32 %v1188_v21, 16  ;;  %v1200_v36 = vshll.u32 %v1188_v21, 16 }
  0xf5   : > { %v683_v25 = vsel %vm619_vm9, %v553_v20, %v651_v22  ;;  %v2885_v20 = vld [vmem:[%s3749_s4 + $0x48] sm:$0xff] }
  0xf6   : > { %v715_v26 = vpack.c.bf16 %v683_v25, %v683_v25  ;;  %v1199_v34 = vrot.slane %v1197_v24, 7  ;;  %924 = vmatpush.bf16.msra.mxu1 %v2885_v20  ;;  %2970 = vmatpush.bf16.msra.mxu3 %v2885_v20 }
  0xf8   : > { %v3143_v31 = vunpack.c.l.b16 %v715_v26  ;;  %v555_v32 = vpop.f32.mrf.mxu0  ;;  %v1202_v42 = vor.u32 %v1200_v36, %v1199_v34 }
  0xf9   : > { %v556_v35 = vadd.f32 %v3089_v16, %v555_v32 }
  0xfa   : > { %v1189_v37 = vpack.c.b16 %v3143_v31, %v3143_v31  ;;  %v1537_v38 = vpack.c.b16 %v3143_v31, %v3131_v18  ;;  %v1260_v55 = vsel %vm3153_vm13, 0, %v1202_v42  ;;  %v2935_v18 = vld [vmem:[%s3749_s4 + $0x1d8] sm:$0xff] }
  0xfb   : > { %vm620_vm12 = vcmp.gt.f32.partialorder %v556_v35, 0.0  ;;  %v652_v39 = vmul.f32 0.1, %v556_v35  ;;  %594 = vmatmul.bf16.gmra.mxu0 %v2865_v27  ;;  %v3172_v0 = vunpack.c.l.b16 %v1260_v55  ;;  %v2884_v27 = vld [vmem:[%s3749_s4 + $0x40] sm:$0xff]  ;;  %v2943_v31 = vld [vmem:[%s3749_s4 + $0x218] sm:$0xff] }
  0xfc   : > { %v1204_v41 = vshrl.u32 %v1189_v37, 16  ;;  %v1207_v48 = vshll.u32 %v1189_v37, 16  ;;  %925 = vmatpush.bf16.msra.mxu1 %v2884_v27  ;;  %2971 = vmatpush.bf16.msra.mxu3 %v2884_v27  ;;  %v2903_v27 = vld [vmem:[%s3749_s4 + $0xd8] sm:$0xff] }
  0xfd   : > { %v684_v43 = vsel %vm620_vm12, %v556_v35, %v652_v39 }
  0xfe   : > { %v716_v49 = vpack.c.bf16 %v684_v43, %v684_v43  ;;  %v1206_v50 = vrot.slane %v1204_v41, 7  ;;  %v2907_v41 = vld [vmem:[%s3749_s4 + $0xf8] sm:$0xff] }
 0x100   : > { %v3160_v52 = vunpack.c.l.b16 %v716_v49  ;;  %v557_v53 = vpop.f32.mrf.mxu0  ;;  %v1209_v54 = vor.u32 %v1207_v48, %v1206_v50  ;;  %1357 = vmatpush.bf16.msrb.mxu1 %v2907_v41 }
 0x101   : > { %v558_v56 = vadd.f32 %v3089_v16, %v557_v53  ;;  %v2906_v53 = vld [vmem:[%s3749_s4 + $0xf0] sm:$0xff] }
 0x102   : > { %v1190_v57 = vpack.c.b16 %v3160_v52, %v3160_v52  ;;  %v1261_v58 = vsel %vm3153_vm13, 0, %v1209_v54 }
 0x103   : > { %vm621_vm14 = vcmp.gt.f32.partialorder %v558_v56, 0.0  ;;  %v653_v61 = vmul.f32 0.1, %v558_v56  ;;  %v3174_v1 = vunpack.c.l.b16 %v1261_v58 }
 0x104   : > { %v1211_v2 = vshrl.u32 %v1190_v57, 16  ;;  %v1214_v15 = vshll.u32 %v1190_v57, 16  ;;  %1358 = vmatpush.bf16.msrb.mxu1 %v2906_v53 }
 0x105   : > { %v685_v3 = vsel %vm621_vm14, %v558_v56, %v653_v61  ;;  %v1301_v4 = vpack.c.b16 %v3174_v1, %v3172_v0 }
 0x106   : > { %v717_v5 = vpack.c.bf16 %v685_v3, %v685_v3  ;;  %v1213_v9 = vrot.slane %v1211_v2, 7  ;;  %v2905_v3 = vld [vmem:[%s3749_s4 + $0xe8] sm:$0xff] }
 0x108   : > { %v3181_v7 = vunpack.c.l.b16 %v717_v5  ;;  %v560_v8 = vpop.f32.mrf.mxu0  ;;  %v1216_v21 = vor.u32 %v1214_v15, %v1213_v9  ;;  %1359 = vmatpush.bf16.msrb.mxu1 %v2905_v3  ;;  %v2904_v15 = vld [vmem:[%s3749_s4 + $0xe0] sm:$0xff] }
 0x109   : > { %v561_v12 = vadd.f32 %v3089_v16, %v560_v8 }
 0x10a   : > { %v1191_v14 = vpack.c.b16 %v3181_v7, %v3181_v7  ;;  %v1538_v17 = vpack.c.b16 %v3181_v7, %v3160_v52  ;;  %v1262_v35 = vsel %vm3153_vm13, 0, %v1216_v21  ;;  %v2940_v7 = vld [vmem:[%s3749_s4 + $0x200] sm:$0xff] }
 0x10b   : > { %vm622_vm15 = vcmp.gt.f32.partialorder %v561_v12, 0.0  ;;  %v654_v19 = vmul.f32 0.1, %v561_v12  ;;  %v3206_v42 = vunpack.c.l.b16 %v1262_v35 }
 0x10c   : > { %v1218_v22 = vshrl.u32 %v1191_v14, 16  ;;  %v1221_v26 = vshll.u32 %v1191_v14, 16  ;;  %1360 = vmatpush.bf16.msrb.mxu1 %v2904_v15 }
 0x10d   : > { %v686_v23 = vsel %vm622_vm15, %v561_v12, %v654_v19 }
 0x10e   : > { %v718_v24 = vpack.c.bf16 %v686_v23, %v686_v23  ;;  %v1220_v25 = vrot.slane %v1218_v22, 7 }
 0x110   : > { %v3194_v28 = vunpack.c.l.b16 %v718_v24  ;;  %v562_v32 = vpop.f32.mrf.mxu0  ;;  %v1223_v34 = vor.u32 %v1221_v26, %v1220_v25  ;;  %1361 = vmatpush.bf16.msrb.mxu1 %v2903_v27  ;;  %v2899_v27 = vld [vmem:[%s3749_s4 + $0xb8] sm:$0xff] }
 0x111   : > { %v563_v36 = vadd.f32 %v3089_v16, %v562_v32  ;;  %1135 = vmatpush.bf16.msrb.mxu3 %v2899_v27 }
 0x112   : > { %v1192_v37 = vpack.c.b16 %v3194_v28, %v3194_v28  ;;  %v1263_v39 = vsel %vm3153_vm13, 0, %v1223_v34 }
 0x113   : > { %vm623_vm0 = vcmp.gt.f32.partialorder %v563_v36, 0.0  ;;  %v655_v40 = vmul.f32 0.1, %v563_v36  ;;  %v3208_v43 = vunpack.c.l.b16 %v1263_v39 }
 0x114   : > { %v1225_v48 = vshrl.u32 %v1192_v37, 16  ;;  %v1228_v61 = vshll.u32 %v1192_v37, 16 }
 0x115   : > { %v687_v49 = vsel %vm623_vm0, %v563_v36, %v655_v40  ;;  %v1302_v50 = vpack.c.b16 %v3208_v43, %v3206_v42  ;;  %v2902_v40 = vld [vmem:[%s3749_s4 + $0xd0] sm:$0xff] }
 0x116   : > { %v719_v51 = vpack.c.bf16 %v687_v49, %v687_v49  ;;  %v1227_v56 = vrot.slane %v1225_v48, 7  ;;  %1362 = vmatpush.bf16.msrb.mxu1 %v2902_v40 }
 0x118   : > { %v3215_v54 = vunpack.c.l.b16 %v719_v51  ;;  %v565_v55 = vpop.f32.mrf.mxu0  ;;  %v1230_v5 = vor.u32 %v1228_v61, %v1227_v56 }
 0x119   : > { %v566_v57 = vadd.f32 %v3089_v16, %v565_v55 }
 0x11a   : > { %v1193_v58 = vpack.c.b16 %v3215_v54, %v3215_v54  ;;  %v1539_v63 = vpack.c.b16 %v3215_v54, %v3194_v28  ;;  %v1264_v22 = vsel %vm3153_vm13, 0, %v1230_v5 }
 0x11b   : > { %vm624_vm1 = vcmp.gt.f32.partialorder %v566_v57, 0.0  ;;  %v656_v2 = vmul.f32 0.1, %v566_v57  ;;  %v3240_v32 = vunpack.c.l.b16 %v1264_v22 }
 0x11c   : > { %v1232_v6 = vshrl.u32 %v1193_v58, 16  ;;  %v1235_v14 = vshll.u32 %v1193_v58, 16  ;;  %v2901_v58 = vld [vmem:[%s3749_s4 + $0xc8] sm:$0xff] }
 0x11d   : > { %v688_v8 = vsel %vm624_vm1, %v566_v57, %v656_v2  ;;  %1363 = vmatpush.bf16.msrb.mxu1 %v2901_v58  ;;  %v2883_v58 = vld [vmem:[%s3749_s4 + $0x38] sm:$0xff] }
 0x11e   : > { %v720_v9 = vpack.c.bf16 %v688_v8, %v688_v8  ;;  %v1234_v12 = vrot.slane %v1232_v6, 7  ;;  %v2992_v6 = vmov 0   ;;  %1019 = vmatpush.bf16.msrb.mxu2 %v2883_v58  ;;  %v2879_v58 = vld [vmem:[%s3749_s4 + $0x18] sm:$0xff] }
 0x11f   : > { %v3260_v8 = vunpack.c.l.b16 %v2992_v6 }
 0x120   : > { %v3228_v19 = vunpack.c.l.b16 %v720_v9  ;;  %v567_v20 = vpop.f32.mrf.mxu0  ;;  %v1237_v21 = vor.u32 %v1235_v14, %v1234_v12  ;;  %v2900_v14 = vld [vmem:[%s3749_s4 + $0xc0] sm:$0xff] }
 0x121   : > { %v568_v23 = vadd.f32 %v3089_v16, %v567_v20  ;;  %1364 = vmatpush.bf16.msrb.mxu1 %v2900_v14 }
 0x122   : > { %v1194_v24 = vpack.c.b16 %v3228_v19, %v3228_v19  ;;  %v1265_v25 = vsel %vm3153_vm13, 0, %v1237_v21 }
 0x123   : > { %vm625_vm2 = vcmp.gt.f32.partialorder %v568_v23, 0.0  ;;  %v657_v26 = vmul.f32 0.1, %v568_v23  ;;  %v3242_v34 = vunpack.c.l.b16 %v1265_v25 }
 0x124   : > { %v1239_v35 = vshrl.u32 %v1194_v24, 16  ;;  %v1242_v55 = vshll.u32 %v1194_v24, 16 }
 0x125   : > { %v689_v36 = vsel %vm625_vm2, %v568_v23, %v657_v26  ;;  %v1303_v37 = vpack.c.b16 %v3242_v34, %v3240_v32 }
 0x126   : > { %v721_v39 = vpack.c.bf16 %v689_v36, %v689_v36  ;;  %v1241_v49 = vrot.slane %v1239_v35, 7 }
 0x128   : > { %v3249_v41 = vunpack.c.l.b16 %v721_v39  ;;  %v570_v48 = vpop.f32.mrf.mxu0  ;;  %v1244_v61 = vor.u32 %v1242_v55, %v1241_v49  ;;  %v2898_v49 = vld [vmem:[%s3749_s4 + $0xb0] sm:$0xff] }
 0x129   : > { %v571_v51 = vadd.f32 %v3089_v16, %v570_v48  ;;  %1136 = vmatpush.bf16.msrb.mxu3 %v2898_v49 }
 0x12a   : > { %v1195_v53 = vpack.c.b16 %v3249_v41, %v3249_v41  ;;  %v1266_v22 = vsel %vm3153_vm13, 0, %v1244_v61 }
 0x12b   : > { %vm626_vm3 = vcmp.gt.f32.partialorder %v571_v51, 0.0  ;;  %v658_v57 = vmul.f32 0.1, %v571_v51  ;;  %v3277_v35 = vunpack.c.l.b16 %v1266_v22 }
 0x12c   : > { %v1246_v2 = vshrl.u32 %v1195_v53, 16  ;;  %v1249_v12 = vshll.u32 %v1195_v53, 16 }
 0x12d   : > { %v690_v3 = vsel %vm626_vm3, %v571_v51, %v658_v57 }
 0x12e   : > { %v722_v5 = vpack.c.bf16 %v690_v3, %v690_v3  ;;  %v1248_v9 = vrot.slane %v1246_v2, 7  ;;  %v2897_v2 = vld [vmem:[%s3749_s4 + $0xa8] sm:$0xff]  ;;  %v2882_v3 = vld [vmem:[%s3749_s4 + $0x30] sm:$0xff] }
 0x12f   : > { %1137 = vmatpush.bf16.msrb.mxu3 %v2897_v2  ;;  %1020 = vmatpush.bf16.msrb.mxu2 %v2882_v3  ;;  %v2893_v3 = vld [vmem:[%s3749_s4 + $0x88] sm:$0xff] }
 0x130   : > { %v572_v15 = vpop.f32.mrf.mxu0  ;;  %v3265_v20 = vunpack.c.l.b16 %v722_v5  ;;  %v1251_v21 = vor.u32 %v1249_v12, %v1248_v9  ;;  %v2896_v12 = vld [vmem:[%s3749_s4 + $0xa0] sm:$0xff] }
 0x131   : > { %v573_v23 = vadd.f32 %v3089_v16, %v572_v15 }
 0x132   : > { %v862_v24 = vpack.c.b16 %v3265_v20, %v3260_v8  ;;  %v1267_v25 = vsel %vm3153_vm13, 0, %v1251_v21 }
 0x133   : > { %vm627_vm4 = vcmp.gt.f32.partialorder %v573_v23, 0.0  ;;  %v659_v26 = vmul.f32 0.1, %v573_v23  ;;  %v3279_v36 = vunpack.c.l.b16 %v1267_v25  ;;  %1138 = vmatpush.bf16.msrb.mxu3 %v2896_v12  ;;  %v2895_v25 = vld [vmem:[%s3749_s4 + $0x98] sm:$0xff]  ;;  %v2878_v12 = vld [vmem:[%s3749_s4 + $0x10] sm:$0xff] }
 0x134   : > { %926 = vmatmul.bf16.vlgmr.msra.gmra.mxu1 %v862_v24 }
 0x135   : > { %v691_v39 = vsel %vm627_vm4, %v573_v23, %v659_v26  ;;  %v1304_v40 = vpack.c.b16 %v3279_v36, %v3277_v35  ;;  %v2881_v23 = vld [vmem:[%s3749_s4 + $0x28] sm:$0xff] }
 0x136   : > { %v723_v48 = vpack.c.bf16 %v691_v39, %v691_v39  ;;  %1021 = vmatpush.bf16.msrb.mxu2 %v2881_v23  ;;  %v2880_v39 = vld [vmem:[%s3749_s4 + $0x20] sm:$0xff] }
 0x137   : > { %1139 = vmatpush.bf16.msrb.mxu3 %v2895_v25  ;;  %v2877_v25 = vld [vmem:[%s3749_s4 + $0x8] sm:$0xff] }
 0x138   : > { %v575_v51 = vpop.f32.mrf.mxu0  ;;  %v3286_v53 = vunpack.c.l.b16 %v723_v48  ;;  %v2894_v48 = vld [vmem:[%s3749_s4 + $0x90] sm:$0xff] }
 0x139   : > { %v576_v55 = vadd.f32 %v3089_v16, %v575_v51 }
 0x13a   : > { %1022 = vmatpush.bf16.msrb.mxu2 %v2880_v39  ;;  %v3759_v60 = vpack.c.b16 %v3286_v53, %v3265_v20 }
 0x13b   : > { %vm628_vm5 = vcmp.gt.f32.partialorder %v576_v55, 0.0  ;;  %v660_v61 = vmul.f32 0.1, %v576_v55  ;;  %1140 = vmatpush.bf16.msrb.mxu3 %v2894_v48 }
 0x13d   : > { %v692_v5 = vsel %vm628_vm5, %v576_v55, %v660_v61 }
 0x13e   : > { %v724_v9 = vpack.c.bf16 %v692_v5, %v692_v5  ;;  %1023 = vmatpush.bf16.msrb.mxu2 %v2879_v58 }
 0x13f   : > { %1141 = vmatpush.bf16.msrb.mxu3 %v2893_v3 }
 0x140   : > { %v577_v14 = vpop.f32.mrf.mxu0  ;;  %v3303_v15 = vunpack.c.l.b16 %v724_v9 }
 0x141   : > { %v578_v21 = vadd.f32 %v3089_v16, %v577_v14  ;;  %v2892_v14 = vld [vmem:[%s3749_s4 + $0x80] sm:$0xff] }
 0x142   : > { %v863_v22 = vpack.c.b16 %v3303_v15, %v3286_v53  ;;  %1024 = vmatpush.bf16.msrb.mxu2 %v2878_v12 }
 0x143   : > { %vm629_vm6 = vcmp.gt.f32.partialorder %v578_v21, 0.0  ;;  %v661_v24 = vmul.f32 0.1, %v578_v21  ;;  %1142 = vmatpush.bf16.msrb.mxu3 %v2892_v14  ;;  %v2915_v14 = vld [vmem:[%s3749_s4 + $0x138] sm:$0xff] }
 0x144   : > { %931 = vmatmul.bf16.gmra.mxu1 %v863_v22 }
 0x145   : > { %v693_v26 = vsel %vm629_vm6, %v578_v21, %v661_v24 }
 0x146   : > { %v725_v27 = vpack.c.bf16 %v693_v26, %v693_v26  ;;  %1025 = vmatpush.bf16.msrb.mxu2 %v2877_v25 }
 0x148   : > { %v580_v49 = vpop.f32.mrf.mxu0  ;;  %v3320_v51 = vunpack.c.l.b16 %v725_v27  ;;  %v2931_v27 = vld [vmem:[%s3749_s4 + $0x1b8] sm:$0xff] }
 0x149   : > { %v581_v55 = vadd.f32 %v3089_v16, %v580_v49  ;;  %1801 = vmatpush.bf16.msra.mxu1 %v2931_v27  ;;  %v2876_v49 = vld [vmem:[%s3749_s4] sm:$0xff] }
 0x14a   : > { %1026 = vmatpush.bf16.msrb.mxu2 %v2876_v49  ;;  %v3761_v20 = vpack.c.b16 %v3320_v51, %v3303_v15 }
 0x14b   : > { %vm630_vm7 = vcmp.gt.f32.partialorder %v581_v55, 0.0  ;;  %v662_v2 = vmul.f32 0.1, %v581_v55 }
 0x14d   : > { %v694_v5 = vsel %vm630_vm7, %v581_v55, %v662_v2  ;;  %v2930_v55 = vld [vmem:[%s3749_s4 + $0x1b0] sm:$0xff] }
 0x14e   : > { %v726_v9 = vpack.c.bf16 %v694_v5, %v694_v5  ;;  %1802 = vmatpush.bf16.msra.mxu1 %v2930_v55  ;;  %v600_v5 = vpop.f32.mrf.mxu2  ;;  %1483 = vmatpush.bf16.msra.mxu2 %v2915_v14  ;;  %v2913_v14 = vld [vmem:[%s3749_s4 + $0x128] sm:$0xff] }
 0x150   : > { %v582_v21 = vpop.f32.mrf.mxu0  ;;  %v3337_v22 = vunpack.c.l.b16 %v726_v9 }
 0x151   : > { %v583_v23 = vadd.f32 %v3089_v16, %v582_v21  ;;  %v2923_v21 = vld [vmem:[%s3749_s4 + $0x178] sm:$0xff] }
 0x152   : > { %v864_v24 = vpack.c.b16 %v3337_v22, %v3320_v51 }
 0x153   : > { %vm631_vm8 = vcmp.gt.f32.partialorder %v583_v23, 0.0  ;;  %v663_v26 = vmul.f32 0.1, %v583_v23 }
 0x154   : > { %936 = vmatmul.bf16.vlgmr.msra.gmra.mxu3 %v864_v24  ;;  %1365 = vmatmul.bf16.vlgmr.msrb.gmra.mxu1 %v1301_v4  ;;  %v2929_v4 = vld [vmem:[%s3749_s4 + $0x1a8] sm:$0xff] }
 0x155   : > { %v695_v39 = vsel %vm631_vm8, %v583_v23, %v663_v26  ;;  %1803 = vmatpush.bf16.msra.mxu1 %v2929_v4  ;;  %v2928_v23 = vld [vmem:[%s3749_s4 + $0x1a0] sm:$0xff]  ;;  %1593 = vmatpush.bf16.msra.mxu3 %v2923_v21  ;;  %v2926_v4 = vld [vmem:[%s3749_s4 + $0x190] sm:$0xff]  ;;  %v2921_v21 = vld [vmem:[%s3749_s4 + $0x168] sm:$0xff] }
 0x156   : > { %v727_v48 = vpack.c.bf16 %v695_v39, %v695_v39 }
 0x158   : > { %v585_v58 = vpop.f32.mrf.mxu0  ;;  %v3357_v2 = vunpack.c.l.b16 %v727_v48  ;;  %v2927_v48 = vld [vmem:[%s3749_s4 + $0x198] sm:$0xff] }
 0x159   : > { %v586_v3 = vadd.f32 %v3089_v16, %v585_v58  ;;  %1804 = vmatpush.bf16.msra.mxu1 %v2928_v23  ;;  %v602_v58 = vpop.f32.mrf.mxu2  ;;  %v2925_v23 = vld [vmem:[%s3749_s4 + $0x188] sm:$0xff] }
 0x15a   : > { %v3763_v15 = vpack.c.b16 %v3357_v2, %v3337_v22 }
 0x15b   : > { %vm632_vm9 = vcmp.gt.f32.partialorder %v586_v3, 0.0  ;;  %v664_v1 = vmul.f32 0.1, %v586_v3 }
 0x15d   : > { %v696_v9 = vsel %vm632_vm9, %v586_v3, %v664_v1  ;;  %1805 = vmatpush.bf16.msra.mxu1 %v2927_v48  ;;  %v2914_v3 = vld [vmem:[%s3749_s4 + $0x130] sm:$0xff]  ;;  %v2924_v48 = vld [vmem:[%s3749_s4 + $0x180] sm:$0xff] }
 0x15e   : > { %v728_v12 = vpack.c.bf16 %v696_v9, %v696_v9  ;;  %v2922_v1 = vld [vmem:[%s3749_s4 + $0x170] sm:$0xff]  ;;  %1484 = vmatpush.bf16.msra.mxu2 %v2914_v3 }
 0x15f   : > { %1594 = vmatpush.bf16.msra.mxu3 %v2922_v1 }
 0x160   : > { %v587_v24 = vpop.f32.mrf.mxu0  ;;  %v3374_v25 = vunpack.c.l.b16 %v728_v12 }
 0x161   : > { %v588_v26 = vadd.f32 %v3089_v16, %v587_v24  ;;  %1806 = vmatpush.bf16.msra.mxu1 %v2926_v4  ;;  %v605_v1 = vpop.f32.mrf.mxu2 }
 0x162   : > { %v865_v27 = vpack.c.b16 %v3374_v25, %v3357_v2  ;;  %1485 = vmatpush.bf16.msra.mxu2 %v2913_v14 }
 0x163   : > { %vm633_vm10 = vcmp.gt.f32.partialorder %v588_v26, 0.0  ;;  %v665_v39 = vmul.f32 0.1, %v588_v26  ;;  %1595 = vmatpush.bf16.msra.mxu3 %v2921_v21  ;;  %v601_v21 = vadd.f32 %v3089_v16, %v600_v5 }
 0x164   : > { %941 = vmatmul.bf16.gmra.mxu3 %v865_v27  ;;  %1370 = vmatmul.bf16.gmra.mxu1 %v1302_v50  ;;  %v741_v27 = vrot.slane %v2992_v6, 7 }
 0x165   : > { %v697_v49 = vsel %vm633_vm10, %v588_v26, %v665_v39  ;;  %v2912_v26 = vld [vmem:[%s3749_s4 + $0x120] sm:$0xff]  ;;  %1807 = vmatpush.bf16.msra.mxu1 %v2925_v23  ;;  %vm638_vm14 = vcmp.gt.f32.partialorder %v601_v21, 0.0 }
 0x166   : > { %v729_v55 = vpack.c.bf16 %v697_v49, %v697_v49  ;;  %1486 = vmatpush.bf16.msra.mxu2 %v2912_v26  ;;  %v805_v6 = vsel %vm3153_vm13, 0, %v741_v27 }
 0x167   : > { %v955_v26 = vunpack.c.l.b16 %v805_v6 }
 0x168   : > { %v3394_v9 = vunpack.c.l.b16 %v729_v55  ;;  %v590_v42 = vpop.f32.mrf.mxu0 }
 0x169   : > { %v591_v43 = vadd.f32 %v3089_v16, %v590_v42  ;;  %1808 = vmatpush.bf16.msra.mxu1 %v2924_v48  ;;  %v603_v48 = vadd.f32 %v3089_v16, %v602_v58  ;;  %v607_v34 = vpop.f32.mrf.mxu2 }
 0x16a   : > { %v608_v6 = vadd.f32 %v3089_v16, %v607_v34  ;;  %v3765_v22 = vpack.c.b16 %v3394_v9, %v3374_v25  ;;  %v2954_v25 = vld [vmem:[%s3751_s6 + $0x30] sm:$0xff] }
 0x16b   : > { %vm634_vm11 = vcmp.gt.f32.partialorder %v591_v43, 0.0  ;;  %v666_v12 = vmul.f32 0.1, %v591_v43  ;;  %vm639_vm15 = vcmp.gt.f32.partialorder %v603_v48, 0.0 }
 0x16c   : > { %vm641_vm1 = vcmp.gt.f32.partialorder %v608_v6, 0.0 }
 0x16d   : > { %v698_v24 = vsel %vm634_vm11, %v591_v43, %v666_v12 }
 0x16e   : > { %v730_v39 = vpack.c.bf16 %v698_v24, %v698_v24  ;;  %v2920_v24 = vld [vmem:[%s3749_s4 + $0x160] sm:$0xff] }
 0x16f   : > { %1596 = vmatpush.bf16.msra.mxu3 %v2920_v24 }
 0x170   : > { %v746_v49 = vshrl.u32 %v730_v39, 16  ;;  %v592_v55 = vpop.f32.mrf.mxu0  ;;  %v3415_v3 = vunpack.c.l.b16 %v730_v39  ;;  %v749_v42 = vshll.u32 %v730_v39, 16 }
 0x171   : > { %v593_v4 = vadd.f32 %v3089_v16, %v592_v55 }
 0x172   : > { %v1079_v43 = vpack.c.b16 %v3415_v3, %v3260_v8  ;;  %v748_v12 = vrot.slane %v746_v49, 7  ;;  %v670_v49 = vmul.f32 0.1, %v601_v21 }
 0x173   : > { %vm635_vm12 = vcmp.gt.f32.partialorder %v593_v4, 0.0  ;;  %v667_v14 = vmul.f32 0.1, %v593_v4 }
 0x174   : > { %1143 = vmatmul.bf16.vlgmr.msrb.gmra.mxu3 %v1079_v43  ;;  %1375 = vmatmul.bf16.gmra.mxu1 %v1303_v37  ;;  %v751_v23 = vor.u32 %v749_v42, %v748_v12  ;;  %v702_v24 = vsel %vm638_vm14, %v601_v21, %v670_v49 }
 0x175   : > { %v699_v8 = vsel %vm635_vm12, %v593_v4, %v667_v14  ;;  %v671_v4 = vmul.f32 0.1, %v603_v48  ;;  %v2911_v14 = vld [vmem:[%s3749_s4 + $0x118] sm:$0xff]  ;;  %v3453_v49 = vpack.c.bf16 %v702_v24, %v702_v24 }
 0x176   : > { %v731_v39 = vpack.c.bf16 %v699_v8, %v699_v8  ;;  %v806_v27 = vsel %vm3153_vm13, 0, %v751_v23  ;;  %v2919_v23 = vld [vmem:[%s3749_s4 + $0x158] sm:$0xff]  ;;  %v606_v8 = vadd.f32 %v3089_v16, %v605_v1  ;;  %1487 = vmatpush.bf16.msra.mxu2 %v2911_v14 }
 0x177   : > { %v956_v5 = vunpack.c.l.b16 %v806_v27  ;;  %v1632_v27 = vpack.c.b16 %v3415_v3, %v3415_v3  ;;  %1597 = vmatpush.bf16.msra.mxu3 %v2919_v23  ;;  %v703_v50 = vsel %vm639_vm15, %v603_v48, %v671_v4 }
 0x178   : > { %v595_v55 = vpop.f32.mrf.mxu0  ;;  %v3432_v43 = vunpack.c.l.b16 %v731_v39  ;;  %v753_v32 = vshrl.u32 %v731_v39, 16  ;;  %v756_v21 = vshll.u32 %v731_v39, 16  ;;  %v3457_v14 = vpack.c.bf16 %v703_v50, %v703_v50 }
 0x179   : > { %v596_v37 = vadd.f32 %v3089_v16, %v595_v55  ;;  %v963_v42 = vpack.c.b16 %v956_v5, %v955_v26  ;;  %v2910_v55 = vld [vmem:[%s3749_s4 + $0x110] sm:$0xff]  ;;  %v672_v57 = vmul.f32 0.1, %v606_v8  ;;  %v1641_v34 = vshrl.u32 %v1632_v27, 16 }
 0x17a   : > { %v1633_v58 = vpack.c.b16 %v3432_v43, %v3432_v43  ;;  %v755_v26 = vrot.slane %v753_v32, 7  ;;  %v673_v32 = vmul.f32 0.1, %v608_v6  ;;  %1488 = vmatpush.bf16.msra.mxu2 %v2910_v55  ;;  %vm640_vm2 = vcmp.gt.f32.partialorder %v606_v8, 0.0  ;;  %v2918_v55 = vld [vmem:[%s3749_s4 + $0x150] sm:$0xff] }
 0x17b   : > { %vm636_vm0 = vcmp.gt.f32.partialorder %v596_v37, 0.0  ;;  %v668_v12 = vmul.f32 0.1, %v596_v37  ;;  %1027 = vmatmul.bf16.vlgmr.msrb.gmra.mxu2 %v963_v42  ;;  %1598 = vmatpush.bf16.msra.mxu3 %v2918_v55  ;;  %v784_v56 = vshll.u32 %v3457_v14, 16  ;;  %v3758_v54 = vpack.c.b16 %v3432_v43, %v3415_v3 }
 0x17c   : > { %v1648_v1 = vshrl.u32 %v1633_v58, 16  ;;  %v705_v13 = vsel %vm641_vm1, %v608_v6, %v673_v32  ;;  %v704_v6 = vsel %vm640_vm2, %v606_v8, %v672_v57  ;;  %v3478_v32 = vunpack.c.l.b16 %v3457_v14 }
 0x17d   : > { %v700_v5 = vsel %vm636_vm0, %v596_v37, %v668_v12  ;;  %v758_v37 = vor.u32 %v756_v21, %v755_v26  ;;  %v774_v26 = vshrl.u32 %v3453_v49, 16  ;;  %v1651_v21 = vshll.u32 %v1633_v58, 16 }
 0x17e   : > { %v732_v42 = vpack.c.bf16 %v700_v5, %v700_v5  ;;  %v1650_v5 = vrot.slane %v1648_v1, 7  ;;  %v1643_v1 = vrot.slane %v1641_v34, 7 }
 0x180   : > { %v597_v0 = vpop.f32.mrf.mxu0  ;;  %v3455_v61 = vunpack.c.l.b16 %v732_v42  ;;  %v760_v12 = vshrl.u32 %v732_v42, 16  ;;  %v763_v4 = vshll.u32 %v732_v42, 16 }
 0x181   : > { %v598_v23 = vadd.f32 %v3089_v16, %v597_v0  ;;  %v807_v16 = vsel %vm3153_vm13, 0, %v758_v37  ;;  %v3468_v0 = vunpack.c.l.b16 %v3453_v49 }
 0x182   : > { %v1080_v39 = vpack.c.b16 %v3455_v61, %v3432_v43  ;;  %v762_v48 = vrot.slane %v760_v12, 7  ;;  %v957_v37 = vunpack.c.l.b16 %v807_v16 }
 0x183   : > { %vm637_vm3 = vcmp.gt.f32.partialorder %v598_v23, 0.0  ;;  %v669_v24 = vmul.f32 0.1, %v598_v23 }
 0x184   : > { %1148 = vmatmul.bf16.gmra.mxu3 %v1080_v39  ;;  %1380 = vmatmul.bf16.gmra.mxu1 %v1304_v40  ;;  %v765_v50 = vor.u32 %v763_v4, %v762_v48  ;;  %v737_v40 = vpack.c.bf16 %v705_v13, %v705_v13  ;;  %v1644_v39 = vshll.u32 %v1632_v27, 16  ;;  %v1653_v48 = vor.u32 %v1651_v21, %v1650_v5 }
 0x185   : > { %v701_v42 = vsel %vm637_vm3, %v598_v23, %v669_v24  ;;  %v3480_v4 = vpack.c.bf16 %v704_v6, %v704_v6  ;;  %v776_v13 = vrot.slane %v774_v26, 7 }
 0x186   : > { %v733_v35 = vpack.c.bf16 %v701_v42, %v701_v42  ;;  %v808_v36 = vsel %vm3153_vm13, 0, %v765_v50  ;;  %v1646_v8 = vor.u32 %v1644_v39, %v1643_v1  ;;  %v777_v50 = vshll.u32 %v3453_v49, 16  ;;  %v2909_v42 = vld [vmem:[%s3749_s4 + $0x108] sm:$0xff] }
 0x187   : > { %v958_v12 = vunpack.c.l.b16 %v808_v36  ;;  %v3488_v55 = vunpack.c.l.b16 %v3480_v4  ;;  %v3490_v27 = vunpack.c.l.b16 %v737_v40  ;;  %v1705_v5 = vsel %vm3153_vm13, 0, %v1653_v48  ;;  %v2917_v49 = vld [vmem:[%s3749_s4 + $0x148] sm:$0xff]  ;;  %1489 = vmatpush.bf16.msra.mxu2 %v2909_v42  ;;  %v2916_v48 = vld [vmem:[%s3749_s4 + $0x140] sm:$0xff] }
 0x188   : > { %v3482_v23 = vunpack.c.l.b16 %v733_v35  ;;  %v767_v57 = vshrl.u32 %v733_v35, 16  ;;  %v770_v6 = vshll.u32 %v733_v35, 16  ;;  %v1704_v21 = vsel %vm3153_vm13, 0, %v1646_v8  ;;  %1599 = vmatpush.bf16.msra.mxu3 %v2917_v49 }
 0x189   : > { %v964_v58 = vpack.c.b16 %v958_v12, %v957_v37  ;;  %v1634_v1 = vpack.c.b16 %v3455_v61, %v3455_v61  ;;  %v1738_v40 = vunpack.c.l.b16 %v1705_v5  ;;  %v779_v12 = vor.u32 %v777_v50, %v776_v13 }
 0x18a   : > { %v769_v24 = vrot.slane %v767_v57, 7  ;;  %v1635_v16 = vpack.c.b16 %v3482_v23, %v3482_v23  ;;  %v1737_v35 = vunpack.c.l.b16 %v1704_v21  ;;  %v1081_v8 = vpack.c.b16 %v3468_v0, %v3482_v23 }
 0x18b   : > { %1032 = vmatmul.bf16.gmra.mxu2 %v964_v58  ;;  %v1655_v57 = vshrl.u32 %v1634_v1, 16  ;;  %v2908_v58 = vld [vmem:[%s3749_s4 + $0x100] sm:$0xff]  ;;  %v810_v13 = vsel %vm3153_vm13, 0, %v779_v12  ;;  %v788_v36 = vshrl.u32 %v3480_v4, 16  ;;  %v1658_v34 = vshll.u32 %v1634_v1, 16 }
 0x18c   : > { %v772_v37 = vor.u32 %v770_v6, %v769_v24  ;;  %v1662_v39 = vshrl.u32 %v1635_v16, 16  ;;  %1600 = vmatpush.bf16.msra.mxu3 %v2916_v48  ;;  %v1745_v42 = vpack.c.b16 %v1738_v40, %v1737_v35  ;;  %1490 = vmatpush.bf16.msra.mxu2 %v2908_v58  ;;  %v960_v49 = vunpack.c.l.b16 %v810_v13 }
 0x18d   : > { %v1657_v6 = vrot.slane %v1655_v57, 7  ;;  %v1665_v21 = vshll.u32 %v1635_v16, 16  ;;  %v781_v48 = vshrl.u32 %v3457_v14, 16  ;;  %v790_v12 = vrot.slane %v788_v36, 7  ;;  %v2947_v14 = vld [vmem:[%s3749_s4 + $0x238] sm:$0xff] }
 0x18e   : > { %v809_v24 = vsel %vm3153_vm13, 0, %v772_v37  ;;  %v1664_v50 = vrot.slane %v1662_v39, 7  ;;  %v791_v39 = vshll.u32 %v3480_v4, 16  ;;  %v1636_v16 = vpack.c.b16 %v3468_v0, %v3468_v0 }
 0x18f   : > { %v959_v5 = vunpack.c.l.b16 %v809_v24  ;;  %v1660_v26 = vor.u32 %v1658_v34, %v1657_v6  ;;  %v783_v37 = vrot.slane %v781_v48, 7  ;;  %v1637_v57 = vpack.c.b16 %v3478_v32, %v3478_v32  ;;  %v2939_v34 = vld [vmem:[%s3749_s4 + $0x1f8] sm:$0xff] }
 0x190   : > { %v1667_v40 = vor.u32 %v1665_v21, %v1664_v50  ;;  %1913 = vmatpush.bf16.msrb.mxu2 %v2939_v34  ;;  %2023 = vmatpush.bf16.msrb.mxu3 %v2947_v14  ;;  %v2938_v50 = vld [vmem:[%s3749_s4 + $0x1f0] sm:$0xff]  ;;  %v1639_v14 = vpack.c.b16 %v3490_v27, %v3490_v27 }
 0x191   : > { %v965_v35 = vpack.c.b16 %v960_v49, %v959_v5  ;;  %v1706_v4 = vsel %vm3153_vm13, 0, %v1660_v26  ;;  %v786_v36 = vor.u32 %v784_v56, %v783_v37  ;;  %v1676_v24 = vshrl.u32 %v1637_v57, 16 }
 0x192   : > { %v1707_v58 = vsel %vm3153_vm13, 0, %v1667_v40  ;;  %v1739_v13 = vunpack.c.l.b16 %v1706_v4  ;;  %v1082_v5 = vpack.c.b16 %v3488_v55, %v3478_v32  ;;  %v1672_v56 = vshll.u32 %v1636_v16, 16 }
 0x193   : > { %v1740_v1 = vunpack.c.l.b16 %v1707_v58  ;;  %v811_v6 = vsel %vm3153_vm13, 0, %v786_v36  ;;  %v1678_v48 = vrot.slane %v1676_v24, 7  ;;  %v1679_v40 = vshll.u32 %v1637_v57, 16  ;;  %v2945_v36 = vld [vmem:[%s3749_s4 + $0x228] sm:$0xff] }
 0x194   : > { %1153 = vmatmul.bf16.gmra.mxu3 %v1081_v8  ;;  %1809 = vmatmul.bf16.vlgmr.msra.gmra.mxu1 %v1745_v42  ;;  %v793_v8 = vor.u32 %v791_v39, %v790_v12  ;;  %v1669_v42 = vshrl.u32 %v1636_v16, 16  ;;  %v961_v37 = vunpack.c.l.b16 %v811_v6  ;;  %v1638_v4 = vpack.c.b16 %v3488_v55, %v3488_v55 }
 0x195   : > { %v1746_v49 = vpack.c.b16 %v1740_v1, %v1739_v13  ;;  %1914 = vmatpush.bf16.msrb.mxu2 %v2938_v50  ;;  %v1681_v58 = vor.u32 %v1679_v40, %v1678_v48  ;;  %v2937_v1 = vld [vmem:[%s3749_s4 + $0x1e8] sm:$0xff]  ;;  %v1690_v13 = vshrl.u32 %v1639_v14, 16  ;;  %v2936_v50 = vld [vmem:[%s3749_s4 + $0x1e0] sm:$0xff] }
 0x196   : > { %v812_v26 = vsel %vm3153_vm13, 0, %v793_v8  ;;  %v1671_v21 = vrot.slane %v1669_v42, 7  ;;  %v1683_v24 = vshrl.u32 %v1638_v4, 16  ;;  %v1686_v6 = vshll.u32 %v1638_v4, 16 }
 0x197   : > { %v962_v12 = vunpack.c.l.b16 %v812_v26  ;;  %v1709_v57 = vsel %vm3153_vm13, 0, %v1681_v58  ;;  %v1692_v26 = vrot.slane %v1690_v13, 7 }
 0x198   : > { %v1674_v39 = vor.u32 %v1672_v56, %v1671_v21  ;;  %v1742_v42 = vunpack.c.l.b16 %v1709_v57  ;;  %v1693_v21 = vshll.u32 %v1639_v14, 16  ;;  %v2944_v56 = vld [vmem:[%s3749_s4 + $0x220] sm:$0xff] }
 0x199   : > { %v966_v34 = vpack.c.b16 %v962_v12, %v961_v37  ;;  %1915 = vmatpush.bf16.msrb.mxu2 %v2937_v1 }
 0x19a   : > { %v1708_v16 = vsel %vm3153_vm13, 0, %v1674_v39  ;;  %v1695_v40 = vor.u32 %v1693_v21, %v1692_v26  ;;  %v2941_v39 = vld [vmem:[%s3749_s4 + $0x208] sm:$0xff] }
 0x19b   : > { %1037 = vmatmul.bf16.gmra.mxu2 %v965_v35  ;;  %v2946_v35 = vld [vmem:[%s3749_s4 + $0x230] sm:$0xff]  ;;  %v1741_v8 = vunpack.c.l.b16 %v1708_v16  ;;  %v3757_v16 = vpack.c.b16 %v3126_v11, %v3124_v10  ;;  %v3760_v11 = vpack.c.b16 %v3482_v23, %v3455_v61  ;;  %v3762_v61 = vpack.c.b16 %v3478_v32, %v3468_v0 }
 0x19c   : > { %2024 = vmatpush.bf16.msrb.mxu3 %v2946_v35  ;;  %v1711_v37 = vsel %vm3153_vm13, 0, %v1695_v40 }
 0x19d   : > { %1916 = vmatpush.bf16.msrb.mxu2 %v2936_v50  ;;  %v1744_v12 = vunpack.c.l.b16 %v1711_v37 }
 0x1a0   : > { %2025 = vmatpush.bf16.msrb.mxu3 %v2945_v36 }
 0x1a1   : > { %1917 = vmatpush.bf16.msrb.mxu2 %v2935_v18  ;;  %v3764_v18 = vpack.c.b16 %v3490_v27, %v3488_v55  ;;  %v2955_v55 = vld [vmem:[%s3751_s6 + $0x38] sm:$0xff] }
 0x1a2   : > { %2168 = vmatpush.bf16.msrb.mxu1 %v2955_v55 }
 0x1a4   : > { %1158 = vmatmul.bf16.gmra.mxu3 %v1082_v5  ;;  %1814 = vmatmul.bf16.gmra.mxu1 %v1746_v49  ;;  %v1747_v5 = vpack.c.b16 %v1742_v42, %v1741_v8  ;;  %v1685_v49 = vrot.slane %v1683_v24, 7 }
 0x1a5   : > { %2026 = vmatpush.bf16.msrb.mxu3 %v2944_v56  ;;  %1918 = vmatpush.bf16.msrb.mxu2 %v2934_v29 }
 0x1a6   : > { %v1688_v48 = vor.u32 %v1686_v6, %v1685_v49  ;;  %2169 = vmatpush.bf16.msrb.mxu1 %v2954_v25 }
 0x1a8   : > { %v1710_v35 = vsel %vm3153_vm13, 0, %v1688_v48 }
 0x1a9   : > { %2027 = vmatpush.bf16.msrb.mxu3 %v2943_v31  ;;  %1919 = vmatpush.bf16.msrb.mxu2 %v2933_v46 }
 0x1ab   : > { %1042 = vmatmul.bf16.gmra.mxu2 %v966_v34  ;;  %v3756_v34 = vpack.c.b16 %v3249_v41, %v3228_v19 }
 0x1ad   : > { %1920 = vmatpush.bf16.msrb.mxu2 %v2932_v44 }
 0x1b1   : > { %v927_v52 = vpop.f32.mrf.mxu1 }
 0x1b4   : > { %1601 = vmatmul.bf16.vlgmr.msra.gmra.mxu3 %v1537_v38  ;;  %1819 = vmatmul.bf16.gmra.mxu1 %v1747_v5  ;;  %v1743_v38 = vunpack.c.l.b16 %v1710_v35 }
 0x1b6   : > { %v1748_v30 = vpack.c.b16 %v1744_v12, %v1743_v38 }
 0x1bb   : > { %1491 = vmatmul.bf16.vlgmr.msra.gmra.mxu2 %v1427_v33  ;;  %v2942_v33 = vld [vmem:[%s3749_s4 + $0x210] sm:$0xff] }
 0x1bc   : > { %2028 = vmatpush.bf16.msrb.mxu3 %v2942_v33 }
 0x1c0   : > { %2029 = vmatpush.bf16.msrb.mxu3 %v2941_v39 }
 0x1c4   : > { %1606 = vmatmul.bf16.gmra.mxu3 %v1538_v17  ;;  %1824 = vmatmul.bf16.gmra.mxu1 %v1748_v30 }
 0x1c5   : > { %2030 = vmatpush.bf16.msrb.mxu3 %v2940_v7 }
 0x1cb   : > { %1496 = vmatmul.bf16.gmra.mxu2 %v1428_v47  ;;  %v929_v47 = vpop.f32.mrf.mxu1 }
 0x1d3   : > { %v932_v58 = vpop.f32.mrf.mxu1 }
 0x1d4   : > { %1611 = vmatmul.bf16.gmra.mxu3 %v1539_v63 }
 0x1d7   : > { %v937_v45 = vpop.f32.mrf.mxu3 }
 0x1db   : > { %1501 = vmatmul.bf16.gmra.mxu2 %v1429_v62  ;;  %v934_v57 = vpop.f32.mrf.mxu1 }
 0x1df   : > { %v939_v17 = vpop.f32.mrf.mxu3 }
 0x1e3   : > { %v1366_v63 = vpop.f32.mrf.mxu1 }
 0x1e4   : > { %1616 = vmatmul.bf16.gmra.mxu3 %v3756_v34 }
 0x1e7   : > { %v942_v14 = vpop.f32.mrf.mxu3 }
 0x1eb   : > { %1506 = vmatmul.bf16.gmra.mxu2 %v3757_v16  ;;  %v3630_v4 = vpop.f32.mrf.mxu1  ;;  %v2952_v16 = vld [vmem:[%s3751_s6 + $0x20] sm:$0xff] }
 0x1ef   : > { %v944_v28 = vpop.f32.mrf.mxu3 }
 0x1f3   : > { %v1371_v42 = vpop.f32.mrf.mxu1 }
 0x1f4   : > { %2031 = vmatmul.bf16.vlgmr.msrb.gmra.mxu3 %v3758_v54 }
 0x1f7   : > { %v1144_v59 = vpop.f32.mrf.mxu3 }
 0x1fb   : > { %1921 = vmatmul.bf16.vlgmr.msrb.gmra.mxu2 %v3759_v60  ;;  %v3640_v49 = vpop.f32.mrf.mxu1 }
 0x1fe   : > { %v1028_v62 = vpop.f32.mrf.mxu2 }
 0x1ff   : > { %v1029_v19 = vadd.f32 %v1028_v62, %v927_v52  ;;  %v1146_v41 = vpop.f32.mrf.mxu3 }
 0x201   : > { %v1164_v1 = vadd.f32 %v1144_v59, %v1029_v19  ;;  %v2951_v59 = vld [vmem:[%s3751_s6 + $0x18] sm:$0xff]  ;;  %v2950_v19 = vld [vmem:[%s3751_s6 + $0x10] sm:$0xff] }
 0x203   : > { %v1386_v10 = vadd.f32 %v1366_v63, %v1164_v1  ;;  %v1376_v51 = vpop.f32.mrf.mxu1 }
 0x204   : > { %2036 = vmatmul.bf16.gmra.mxu3 %v3760_v11 }
 0x206   : > { %v1030_v36 = vpop.f32.mrf.mxu2 }
 0x207   : > { %v1031_v3 = vadd.f32 %v1030_v36, %v929_v47  ;;  %v1149_v43 = vpop.f32.mrf.mxu3 }
 0x209   : > { %v3635_v8 = vadd.f32 %v1146_v41, %v1031_v3  ;;  %v2949_v3 = vld [vmem:[%s3751_s6 + $0x8] sm:$0xff] }
 0x20b   : > { %1926 = vmatmul.bf16.gmra.mxu2 %v3761_v20  ;;  %v3653_v38 = vpop.f32.mrf.mxu1  ;;  %v2948_v20 = vld [vmem:[%s3751_s6] sm:$0xff] }
 0x20e   : > { %v1033_v53 = vpop.f32.mrf.mxu2 }
 0x20f   : > { %v1034_v24 = vadd.f32 %v1033_v53, %v932_v58  ;;  %v1151_v13 = vpop.f32.mrf.mxu3  ;;  %v2953_v58 = vld [vmem:[%s3751_s6 + $0x28] sm:$0xff] }
 0x210   : > { %2170 = vmatpush.bf16.msrb.mxu1 %v2953_v58 }
 0x211   : > { %v1166_v50 = vadd.f32 %v1149_v43, %v1034_v24 }
 0x213   : > { %v1388_v5 = vadd.f32 %v1371_v42, %v1166_v50  ;;  %v1381_v27 = vpop.f32.mrf.mxu1 }
 0x214   : > { %2041 = vmatmul.bf16.gmra.mxu3 %v3762_v61  ;;  %2171 = vmatpush.bf16.msrb.mxu1 %v2952_v16 }
 0x216   : > { %v1035_v23 = vpop.f32.mrf.mxu2 }
 0x217   : > { %v1036_v6 = vadd.f32 %v1035_v23, %v934_v57  ;;  %v1154_v26 = vpop.f32.mrf.mxu3 }
 0x218   : > { %2172 = vmatpush.bf16.msrb.mxu1 %v2951_v59 }
 0x219   : > { %v3645_v21 = vadd.f32 %v1151_v13, %v1036_v6 }
 0x21b   : > { %1931 = vmatmul.bf16.gmra.mxu2 %v3763_v15  ;;  %v3682_v36 = vpop.f32.mrf.mxu1 }
 0x21c   : > { %2173 = vmatpush.bf16.msrb.mxu1 %v2950_v19 }
 0x21e   : > { %v1038_v56 = vpop.f32.mrf.mxu2 }
 0x21f   : > { %v1039_v48 = vadd.f32 %v1038_v56, %v937_v45  ;;  %v1156_v40 = vpop.f32.mrf.mxu3 }
 0x220   : > { %2174 = vmatpush.bf16.msrb.mxu1 %v2949_v3 }
 0x221   : > { %v1168_v35 = vadd.f32 %v1154_v26, %v1039_v48  ;;  %v1387_v26 = vadd.f32 %v3630_v4, %v3635_v8  ;;  %v1389_v8 = vadd.f32 %v3640_v49, %v3645_v21 }
 0x223   : > { %v1390_v37 = vadd.f32 %v1376_v51, %v1168_v35  ;;  %v1810_v53 = vpop.f32.mrf.mxu1 }
 0x224   : > { %2046 = vmatmul.bf16.gmra.mxu3 %v3764_v18  ;;  %2175 = vmatpush.bf16.msrb.mxu1 %v2948_v20 }
 0x226   : > { %v1040_v0 = vpop.f32.mrf.mxu2 }
 0x227   : > { %v1041_v32 = vadd.f32 %v1040_v0, %v939_v17  ;;  %v1159_v31 = vpop.f32.mrf.mxu3  ;;  %v3701_v0 = vld [vmem:[%s3750_s5] ss:$0 sm:$0xff] }
 0x229   : > { %v3655_v12 = vadd.f32 %v1156_v40, %v1041_v32 }
 0x22b   : > { %1936 = vmatmul.bf16.gmra.mxu2 %v3765_v22  ;;  %v1812_v6 = vpop.f32.mrf.mxu1 }
 0x22e   : > { %v1043_v2 = vpop.f32.mrf.mxu2 }
 0x22f   : > { %v1044_v29 = vadd.f32 %v1043_v2, %v942_v14  ;;  %v1161_v30 = vpop.f32.mrf.mxu3 }
 0x231   : > { %v1170_v33 = vadd.f32 %v1159_v31, %v1044_v29 }
 0x233   : > { %v1392_v46 = vadd.f32 %v1381_v27, %v1170_v33 }
 0x236   : > { %v1045_v39 = vpop.f32.mrf.mxu2 }
 0x237   : > { %v1046_v52 = vadd.f32 %v1045_v39, %v944_v28  ;;  %v1602_v7 = vpop.f32.mrf.mxu3 }
 0x239   : > { %v3663_v44 = vadd.f32 %v1161_v30, %v1046_v52 }
 0x23e   : > { %v1492_v9 = vpop.f32.mrf.mxu2 }
 0x23f   : > { %v1512_v45 = vadd.f32 %v1492_v9, %v1386_v10  ;;  %v1604_v47 = vpop.f32.mrf.mxu3 }
 0x241   : > { %v1622_v17 = vadd.f32 %v1602_v7, %v1512_v45 }
 0x243   : > { %v1830_v51 = vadd.f32 %v1810_v53, %v1622_v17 }
 0x246   : > { %v1494_v34 = vpop.f32.mrf.mxu2 }
 0x247   : > { %v1607_v14 = vpop.f32.mrf.mxu3  ;;  %v1513_v15 = vadd.f32 %v1494_v34, %v1387_v26 }
 0x249   : > { %v1623_v35 = vadd.f32 %v1604_v47, %v1513_v15  ;;  %v1393_v15 = vadd.f32 %v3682_v36, %v3663_v44 }
 0x24b   : > { %v1831_v32 = vadd.f32 %v1812_v6, %v1623_v35 }
 0x24e   : > { %v1497_v57 = vpop.f32.mrf.mxu2 }
 0x24f   : > { %v1514_v28 = vadd.f32 %v1497_v57, %v1388_v5  ;;  %v1609_v54 = vpop.f32.mrf.mxu3 }
 0x251   : > { %v1624_v63 = vadd.f32 %v1607_v14, %v1514_v28 }
 0x256   : > { %v1499_v60 = vpop.f32.mrf.mxu2 }
 0x257   : > { %v1612_v62 = vpop.f32.mrf.mxu3  ;;  %v1515_v27 = vadd.f32 %v1499_v60, %v1389_v8 }
 0x259   : > { %v1625_v17 = vadd.f32 %v1609_v54, %v1515_v27 }
 0x25e   : > { %v1502_v41 = vpop.f32.mrf.mxu2 }
 0x25f   : > { %v1516_v1 = vadd.f32 %v1502_v41, %v1390_v37  ;;  %v3680_v10 = vpop.f32.mrf.mxu3  ;;  %v1815_v37 = vpop.f32.mrf.mxu1 }
 0x260   : > { %v1832_v39 = vadd.f32 %v1815_v37, %v1624_v63  ;;  %v1391_v63 = vadd.f32 %v3653_v38, %v3655_v12 }
 0x261   : > { %v1626_v11 = vadd.f32 %v1612_v62, %v1516_v1 }
 0x266   : > { %v1504_v43 = vpop.f32.mrf.mxu2 }
 0x267   : > { %v1617_v42 = vpop.f32.mrf.mxu3  ;;  %v1817_v55 = vpop.f32.mrf.mxu1  ;;  %v1517_v62 = vadd.f32 %v1504_v43, %v1391_v63 }
 0x268   : > { %v1833_v34 = vadd.f32 %v1817_v55, %v1625_v17  ;;  %v2198_v17 = vld [vmem:[%s3728_s16 + $0x8] sm:$0xff] }
 0x26e   : > { %v1507_v24 = vpop.f32.mrf.mxu2 }
 0x26f   : > { %v1518_v13 = vadd.f32 %v1507_v24, %v1392_v46  ;;  %v3690_v50 = vpop.f32.mrf.mxu3  ;;  %v1820_v49 = vpop.f32.mrf.mxu1  ;;  %v1627_v24 = vadd.f32 %v3680_v10, %v1517_v62  ;;  %v2201_v62 = vld [vmem:[%s3728_s16 + $0x20] sm:$0xff] }
 0x270   : > { %v1834_v19 = vadd.f32 %v1820_v49, %v1626_v11 }
 0x271   : > { %v3692_v5 = vadd.f32 %v1617_v42, %v1518_v13 }
 0x276   : > { %v3694_v61 = vpop.f32.mrf.mxu2 }
 0x277   : > { %v2032_v23 = vpop.f32.mrf.mxu3  ;;  %v1822_v20 = vpop.f32.mrf.mxu1 }
 0x278   : > { %v1835_v38 = vadd.f32 %v1822_v20, %v1627_v24 }
 0x27e   : > { %v1922_v56 = vpop.f32.mrf.mxu2 }
 0x27f   : > { %v1942_v48 = vadd.f32 %v1922_v56, %v1830_v51  ;;  %v2034_v40 = vpop.f32.mrf.mxu3  ;;  %v1825_v11 = vpop.f32.mrf.mxu1 }
 0x281   : > { %v2052_v18 = vadd.f32 %v2032_v23, %v1942_v48  ;;  %v1519_v48 = vadd.f32 %v3694_v61, %v1393_v15 }
 0x283   : > { %v2064_v22 = vadd.f32 %v3701_v0, %v2052_v18 }
 0x285   : > { %v2080_v30 = vmul.f32 0.1, %v2064_v22  ;;  %vm2072_vm13 = vcmp.gt.f32.partialorder %v2064_v22, 0.0 }
 0x286   : > { %v1924_v31 = vpop.f32.mrf.mxu2 }
 0x287   : > { %v1943_v2 = vadd.f32 %v1924_v31, %v1831_v32  ;;  %v2037_v29 = vpop.f32.mrf.mxu3  ;;  %v2088_v25 = vsel %vm2072_vm13, %v2064_v22, %v2080_v30  ;;  %v1827_v36 = vpop.f32.mrf.mxu1 }
 0x289   : > { %v2053_v4 = vadd.f32 %v2034_v40, %v1943_v2  ;;  %v1836_v40 = vadd.f32 %v1825_v11, %v3692_v5  ;;  %v1629_v2 = vadd.f32 %v3690_v50, %v1519_v48 }
 0x28b   : > { %v2065_v33 = vadd.f32 %v3701_v0, %v2053_v4 }
 0x28d   : > { %vm2073_vm4 = vcmp.gt.f32.partialorder %v2065_v33, 0.0  ;;  %v2081_v46 = vmul.f32 0.1, %v2065_v33 }
 0x28e   : > { %v1927_v52 = vpop.f32.mrf.mxu2 }
 0x28f   : > { %v1944_v7 = vadd.f32 %v1927_v52, %v1832_v39  ;;  %v2089_v9 = vsel %vm2073_vm4, %v2065_v33, %v2081_v46  ;;  %v2039_v45 = vpop.f32.mrf.mxu3 }
 0x290   : > { %v2096_v47 = vpack.c.bf16 %v2089_v9, %v2088_v25 }
 0x291   : > { %v2054_v58 = vadd.f32 %v2037_v29, %v1944_v7  ;;  %v1837_v29 = vadd.f32 %v1827_v36, %v1629_v2 }
 0x292   : > { %2176 = vmatmul.bf16.vlgmr.msrb.gmra.mxu1 %v2096_v47  ;;  %v2983_v47 = vld [vmem:[%s3752_s7] ss:$0 sm:$0xff] }
 0x293   : > { %v2066_v14 = vadd.f32 %v3701_v0, %v2054_v58 }
 0x295   : > { %v2082_v60 = vmul.f32 0.1, %v2066_v14  ;;  %vm2074_vm5 = vcmp.gt.f32.partialorder %v2066_v14, 0.0 }
 0x296   : > { %v1929_v21 = vpop.f32.mrf.mxu2 }
 0x297   : > { %v1945_v16 = vadd.f32 %v1929_v21, %v1833_v34  ;;  %v2042_v28 = vpop.f32.mrf.mxu3  ;;  %v2090_v3 = vsel %vm2074_vm5, %v2066_v14, %v2082_v60  ;;  %v2197_v21 = vld [vmem:[%s3728_s16] sm:$0xff]  ;;  %v2199_v14 = vld [vmem:[%s3728_s16 + $0x10] sm:$0xff] }
 0x299   : > { %v2055_v57 = vadd.f32 %v2039_v45, %v1945_v16 }
 0x29b   : > { %v2067_v59 = vadd.f32 %v3701_v0, %v2055_v57 }
 0x29d   : > { %vm2075_vm6 = vcmp.gt.f32.partialorder %v2067_v59, 0.0  ;;  %v2083_v54 = vmul.f32 0.1, %v2067_v59 }
 0x29e   : > { %v1932_v41 = vpop.f32.mrf.mxu2 }
 0x29f   : > { %v1946_v1 = vadd.f32 %v1932_v41, %v1834_v19  ;;  %v2091_v42 = vsel %vm2075_vm6, %v2067_v59, %v2083_v54  ;;  %v2044_v23 = vpop.f32.mrf.mxu3 }
 0x2a0   : > { %v2097_v53 = vpack.c.bf16 %v2091_v42, %v2090_v3 }
 0x2a1   : > { %v2056_v13 = vadd.f32 %v2042_v28, %v1946_v1  ;;  %v2200_v28 = vld [vmem:[%s3728_s16 + $0x18] sm:$0xff]  ;;  %v2202_v1 = vld [vmem:[%s3728_s16 + $0x28] sm:$0xff] }
 0x2a2   : > { %2181 = vmatmul.bf16.gmra.mxu1 %v2097_v53 }
 0x2a3   : > { %v2068_v6 = vadd.f32 %v3701_v0, %v2056_v13  ;;  %v2203_v13 = vld [vmem:[%s3728_s16 + $0x30] sm:$0xff] }
 0x2a5   : > { %v2084_v51 = vmul.f32 0.1, %v2068_v6  ;;  %vm2076_vm7 = vcmp.gt.f32.partialorder %v2068_v6, 0.0 }
 0x2a6   : > { %v1934_v12 = vpop.f32.mrf.mxu2 }
 0x2a7   : > { %v1947_v26 = vadd.f32 %v1934_v12, %v1835_v38  ;;  %v2047_v35 = vpop.f32.mrf.mxu3  ;;  %v2092_v32 = vsel %vm2076_vm7, %v2068_v6, %v2084_v51 }
 0x2a9   : > { %v2057_v43 = vadd.f32 %v2044_v23, %v1947_v26 }
 0x2ab   : > { %v2069_v56 = vadd.f32 %v3701_v0, %v2057_v43 }
 0x2ad   : > { %v2085_v10 = vmul.f32 0.1, %v2069_v56  ;;  %vm2077_vm8 = vcmp.gt.f32.partialorder %v2069_v56, 0.0 }
 0x2ae   : > { %v1937_v37 = vpop.f32.mrf.mxu2 }
 0x2af   : > { %v1948_v18 = vadd.f32 %v1937_v37, %v1836_v40  ;;  %v2093_v31 = vsel %vm2077_vm8, %v2069_v56, %v2085_v10  ;;  %v2049_v30 = vpop.f32.mrf.mxu3  ;;  %v2204_v56 = vld [vmem:[%s3728_s16 + $0x38] sm:$0xff] }
 0x2b0   : > { %v2098_v22 = vpack.c.bf16 %v2093_v31, %v2092_v32 }
 0x2b1   : > { %v2058_v44 = vadd.f32 %v2047_v35, %v1948_v18 }
 0x2b2   : > { %2186 = vmatmul.bf16.gmra.mxu1 %v2098_v22 }
 0x2b3   : > { %v2070_v8 = vadd.f32 %v3701_v0, %v2058_v44 }
 0x2b5   : > { %v2086_v33 = vmul.f32 0.1, %v2070_v8  ;;  %vm2078_vm9 = vcmp.gt.f32.partialorder %v2070_v8, 0.0 }
 0x2b6   : > { %v1939_v4 = vpop.f32.mrf.mxu2 }
 0x2b7   : > { %v1949_v61 = vadd.f32 %v1939_v4, %v1837_v29  ;;  %v2094_v46 = vsel %vm2078_vm9, %v2070_v8, %v2086_v33 }
 0x2b9   : > { %v2059_v5 = vadd.f32 %v2049_v30, %v1949_v61 }
 0x2bb   : > { %v2071_v55 = vadd.f32 %v3701_v0, %v2059_v5 }
 0x2bd   : > { %v2087_v27 = vmul.f32 0.1, %v2071_v55  ;;  %vm2079_vm10 = vcmp.gt.f32.partialorder %v2071_v55, 0.0 }
 0x2bf   : > { %v2095_v39 = vsel %vm2079_vm10, %v2071_v55, %v2087_v27 }
 0x2c0   : > { %v2099_v50 = vpack.c.bf16 %v2095_v39, %v2094_v46 }
 0x2c2   : > { %2191 = vmatmul.bf16.gmra.mxu1 %v2099_v50 }
 0x30f   : > { %v2177_v52 = vpop.f32.mrf.mxu1 }
 0x310   : > { %v2178_v34 = vadd.f32 %v2983_v47, %v2177_v52 }
 0x312   : > { %v2205_v63 = vsub.f32 %v2178_v34, %v2197_v21 }
 0x314   : > { %v2213_v42 = vmul.f32 %v2205_v63, %v2205_v63 }
 0x317   : > { %v2179_v7 = vpop.f32.mrf.mxu1 }
 0x318   : > { %v2180_v0 = vadd.f32 %v2983_v47, %v2179_v7 }
 0x31a   : > { %v2206_v16 = vsub.f32 %v2180_v0, %v2198_v17 }
 0x31c   : > { %v2214_v19 = vmul.f32 %v2206_v16, %v2206_v16 }
 0x31e   : > { %v2221_v23 = vadd.f32 %v2214_v19, %v2213_v42 }
 0x31f   : > { %v2182_v25 = vpop.f32.mrf.mxu1 }
 0x320   : > { %v2183_v49 = vadd.f32 %v2983_v47, %v2182_v25 }
 0x322   : > { %v2207_v59 = vsub.f32 %v2183_v49, %v2199_v14 }
 0x324   : > { %v2215_v20 = vmul.f32 %v2207_v59, %v2207_v59 }
 0x326   : > { %v2222_v6 = vadd.f32 %v2221_v23, %v2215_v20 }
 0x327   : > { %v2184_v9 = vpop.f32.mrf.mxu1 }
 0x328   : > { %v2185_v57 = vadd.f32 %v2983_v47, %v2184_v9 }
 0x32a   : > { %v2208_v54 = vsub.f32 %v2185_v57, %v2200_v28 }
 0x32c   : > { %v2216_v38 = vmul.f32 %v2208_v54, %v2208_v54 }
 0x32e   : > { %v2223_v11 = vadd.f32 %v2222_v6, %v2216_v38 }
 0x32f   : > { %v2187_v45 = vpop.f32.mrf.mxu1 }
 0x330   : > { %v2188_v60 = vadd.f32 %v2983_v47, %v2187_v45 }
 0x332   : > { %v2209_v53 = vsub.f32 %v2188_v60, %v2201_v62 }
 0x334   : > { %v2217_v26 = vmul.f32 %v2209_v53, %v2209_v53 }
 0x336   : > { %v2224_v48 = vadd.f32 %v2223_v11, %v2217_v26 }
 0x337   : > { %v2189_v58 = vpop.f32.mrf.mxu1 }
 0x338   : > { %v2190_v41 = vadd.f32 %v2983_v47, %v2189_v58 }
 0x33a   : > { %v2210_v12 = vsub.f32 %v2190_v41, %v2202_v1 }
 0x33c   : > { %v2218_v15 = vmul.f32 %v2210_v12, %v2210_v12 }
 0x33e   : > { %v2225_v35 = vadd.f32 %v2224_v48, %v2218_v15 }
 0x33f   : > { %v2192_v3 = vpop.f32.mrf.mxu1 }
 0x340   : > { %v2193_v24 = vadd.f32 %v2983_v47, %v2192_v3 }
 0x342   : > { %v2211_v43 = vsub.f32 %v2193_v24, %v2203_v13 }
 0x344   : > { %v2219_v10 = vmul.f32 %v2211_v43, %v2211_v43 }
 0x346   : > { %v2226_v18 = vadd.f32 %v2225_v35, %v2219_v10 }
 0x347   : > { %v2194_v51 = vpop.f32.mrf.mxu1 }
 0x348   : > { %v2195_v40 = vadd.f32 %v2983_v47, %v2194_v51 }
 0x34a   : > { %v2212_v37 = vsub.f32 %v2195_v40, %v2204_v56 }
 0x34c   : > { %v2220_v32 = vmul.f32 %v2212_v37, %v2212_v37 }
 0x34e   : > { %v2227_v31 = vadd.f32 %v2226_v18, %v2220_v32 }
 0x350   : > { %2228 = vst [vmem:[%s323_s20] sm:$0xff] %v2227_v31 }
 0x351 PF: > { %s18_s27 = sadd.s32 1, %s2990_s27  }
 0x352   : > { %p15_p4 = scmp.ge.s32.totalorder %s18_s27, 4  }
 0x354   :  { %17 = sbr.rel (!%p15_p4) target bundleno = 1 (0x1), region = 93 }

</bundles_post_ra>
